<compile_context>
chip_gen: v6e
topology: v6e:2x2x1
jax: 0.10.0
libtpu: 0.0.40
codegen_flags: <defaults>
</compile_context>

<pallas_src>
import functools

import numpy as np
import jax
import jax.numpy as jnp
from jax.experimental import pallas as pl
from jax.experimental.pallas import tpu as pltpu


# ------------------------------ fused Pallas kernel ------------------------------

def _attn_block_kernel(xf_ref, xt_ref, gmat_ref, gamma_ref, beta_ref,
                       wq_ref, bq_ref, wkv_ref, bkv_ref, wp_ref, bp_ref,
                       o_ref, *, eps, cp):
    f32 = jnp.float32

    xf = xf_ref[0].astype(f32)                                      # (C, HW)

    # --- GroupNorm(32): two-pass (mean first, then centered sum of squares) ---
    # gmat[c, c'] = 1/(HW*group_size) iff c, c' share a group, so
    # sum_lanes(gmat @ y) is the per-channel group mean of y.
    gmat = gmat_ref[...]
    mean = jnp.sum(jnp.dot(gmat, xf, preferred_element_type=f32),
                   axis=1, keepdims=True)                           # (C, 1)
    xc = xf - mean
    var = jnp.sum(jnp.dot(gmat, xc * xc, preferred_element_type=f32),
                  axis=1, keepdims=True)                            # (C, 1)
    scale_c = jax.lax.rsqrt(var + eps) * gamma_ref[...]             # (C, 1)
    beta = beta_ref[...]                                            # (C, 1)
    xn = xc * scale_c + beta                                        # (C, HW), all tokens

    # --- fused K/V projection (one matmul), channels on sublanes ---
    # wkv = [Wk ; 0 ; Wv ; 0] stacked to 2*CP rows: K and V live in 128-aligned sublane
    # blocks, slices below are free, padded rows are exactly zero.
    kv = jnp.dot(wkv_ref[...], xn, preferred_element_type=f32) + bkv_ref[...]   # (2CP, HW)
    k = kv[:cp, :]                                                  # (CP, HW)
    v = kv[cp:, :]                                                  # (CP, HW)

    # --- Q for this tile's rows only (1/sqrt(C) already folded into wq/bq) ---
    xt = xt_ref[0].astype(f32)                                      # (C, TQ)
    xn_t = (xt - mean) * scale_c + beta                             # (C, TQ)
    q = jnp.dot(jnp.transpose(xn_t, (1, 0)), wq_ref[...],
                preferred_element_type=f32) + bq_ref[...]           # (TQ, CP)

    # --- attention for the TQ query rows (live score is (TQ, HW), not (HW, HW)) ---
    s = jnp.dot(q, k, preferred_element_type=f32)                   # (TQ, HW), K-depth = CP
    p = jnp.exp(s - jnp.max(s, axis=-1, keepdims=True))
    h = jax.lax.dot_general(p, v, (((1,), (1,)), ((), ())),
                            preferred_element_type=f32)             # (TQ, CP)
    # deferred softmax normalization: divide the (TQ, CP) output, not the (TQ, HW) probs
    h = h * pl.reciprocal(jnp.sum(p, axis=-1, keepdims=True), approx=True)

    # --- proj_out (back to channels-on-sublanes) + residual ---
    # Residual is the re-assigned, *normalized* x, matching the PyTorch forward().
    proj = jax.lax.dot_general(wp_ref[...], h, (((1,), (1,)), ((), ())),
                               preferred_element_type=f32)          # (C, TQ)
    o_ref[0] = (xn_t + proj + bp_ref[...]).astype(o_ref.dtype)      # lane-dense store


def attn_block_forward(x_BCHW, params, *, num_groups=32, eps=1e-6):
    B, C, H, W = x_BCHW.shape
    assert C % num_groups == 0, "GroupNorm(32) requires channels divisible by 32"
    HW = H * W
    gs = C // num_groups

    # q-row tile: 128 keeps output stores lane-dense and the live score <= (128, HW)
    TQ = 128 if HW % 128 == 0 else HW
    QT = HW // TQ

    # lane/sublane-aligned padded channel width for the q/k/v/proj weight blocks
    CP = ((C + 127) // 128) * 128
    scale = 1.0 / float(np.sqrt(C))
    f32 = jnp.float32

    # same-group indicator with 1/(HW*group_size) pre-folded in
    gmat = np.zeros((C, C), dtype=np.float32)
    inv_count = 1.0 / float(HW * gs)
    for g in range(num_groups):
        gmat[g * gs:(g + 1) * gs, g * gs:(g + 1) * gs] = inv_count
    gmat = jnp.asarray(gmat)

    gamma_c = params["gamma"].reshape(C, 1).astype(f32)
    beta_c = params["beta"].reshape(C, 1).astype(f32)

    def pad_cols(w):                                 # (C, n) -> (C, CP)
        return jnp.pad(w.astype(f32), ((0, 0), (0, CP - w.shape[1])))

    def pad_rows(w):                                 # (n, C) -> (CP, C)
        return jnp.pad(w.astype(f32), ((0, CP - w.shape[0]), (0, 0)))

    def pad_vec(b):                                  # (n,) -> (CP,)
        return jnp.pad(b.astype(f32), (0, CP - b.shape[0]))

    # q path: token-major, attention scale folded in
    wq_p = pad_cols(params["wq"].T * scale)                          # (C, CP)
    bq_p = pad_vec(params["bq"] * scale).reshape(1, CP)              # (1, CP)
    # k/v path: channel-major, fused + zero-padded to 128-aligned sublane blocks
    wkv_p = jnp.concatenate([pad_rows(params["wk"]), pad_rows(params["wv"])], axis=0)  # (2CP, C)
    bkv_p = jnp.concatenate([pad_vec(params["bk"]), pad_vec(params["bv"])]).reshape(2 * CP, 1)
    # proj_out: channel-major output, zero-padded input channels
    wp_p = pad_cols(params["wp"])                                    # (C, CP)
    bp_c = params["bp"].reshape(C, 1).astype(f32)

    # NCHW stays NCHW: only free reshapes at the boundary; relayout happens in-kernel.
    x_flat = x_BCHW.reshape(B, C, HW)

    fixed = lambda shape: pl.BlockSpec(shape, lambda b, t: (0,) * len(shape))

    out_flat = pl.pallas_call(
        functools.partial(_attn_block_kernel, eps=float(eps), cp=CP),
        grid=(B, QT),
        in_specs=[
            pl.BlockSpec((1, C, HW), lambda b, t: (b, 0, 0)),   # x, full image (resident per b)
            pl.BlockSpec((1, C, TQ), lambda b, t: (b, 0, t)),   # x, this q-row tile
            fixed((C, C)),                                      # gmat (inv_count folded in)
            fixed((C, 1)), fixed((C, 1)),                       # gamma, beta
            fixed((C, CP)), fixed((1, CP)),                     # wq*scale, bq*scale (padded)
            fixed((2 * CP, C)), fixed((2 * CP, 1)),             # [wk;wv], [bk;bv] (padded)
            fixed((C, CP)), fixed((C, 1)),                      # wp (padded cols), bp
        ],
        out_specs=pl.BlockSpec((1, C, TQ), lambda b, t: (b, 0, t)),
        out_shape=jax.ShapeDtypeStruct((B, C, HW), x_BCHW.dtype),
        compiler_params=pltpu.CompilerParams(
            dimension_semantics=("parallel", "parallel")),
    )(x_flat, x_flat, gmat, gamma_c, beta_c, wq_p, bq_p, wkv_p, bkv_p, wp_p, bp_c)

    return out_flat.reshape(B, C, H, W)


# ------------------------------ pure-JAX reference ------------------------------

def attn_block_reference(x_BCHW, params, *, num_groups=32, eps=1e-6):
    B, C, H, W = x_BCHW.shape
    x = x_BCHW.astype(jnp.float32)
    xg = x.reshape(B, num_groups, C // num_groups, H, W)
    mean = xg.mean(axis=(2, 3, 4), keepdims=True)
    var = xg.var(axis=(2, 3, 4), keepdims=True)
    xn = ((xg - mean) / jnp.sqrt(var + eps)).reshape(B, C, H, W)
    xn = xn * params["gamma"][None, :, None, None] + params["beta"][None, :, None, None]

    def conv1x1(t, w, b):
        return jnp.einsum('bchw,oc->bohw', t, w) + b[None, :, None, None]

    q = conv1x1(xn, params["wq"], params["bq"])
    k = conv1x1(xn, params["wk"], params["bk"])
    v = conv1x1(xn, params["wv"], params["bv"])
    qf = q.reshape(B, C, H * W).transpose(0, 2, 1)
    kf = k.reshape(B, C, H * W).transpose(0, 2, 1)
    vf = v.reshape(B, C, H * W).transpose(0, 2, 1)
    s = jnp.einsum('blc,bmc->blm', qf, kf) / np.sqrt(C)
    p = jax.nn.softmax(s, axis=-1)
    h = jnp.einsum('blm,bmc->blc', p, vf).transpose(0, 2, 1).reshape(B, C, H, W)
    return xn + conv1x1(h, params["wp"], params["bp"])


# ----------------------------------- params -----------------------------------

def init_params(key, C):
    ks = jax.random.split(key, 10)
    bound = 1.0 / np.sqrt(C)
    uni = lambda k, shp: jax.random.uniform(k, shp, jnp.float32, -bound, bound)
    return dict(
        gamma=1.0 + 0.1 * jax.random.normal(ks[0], (C,), jnp.float32),
        beta=0.1 * jax.random.normal(ks[1], (C,), jnp.float32),
        wq=uni(ks[2], (C, C)), bq=uni(ks[3], (C,)),
        wk=uni(ks[4], (C, C)), bk=uni(ks[5], (C,)),
        wv=uni(ks[6], (C, C)), bv=uni(ks[7], (C,)),
        wp=uni(ks[8], (C, C)), bp=uni(ks[9], (C,)),
    )


# ------------------------------------ main ------------------------------------

if __name__ == "__main__":
    # GroupNorm(32) requires channels % 32 == 0, so C = 64 is the smallest nontrivial size.
    B, C, H, W = 2, 64, 16, 16

    key = jax.random.PRNGKey(0)
    kx, kp = jax.random.split(key)
    x = jax.random.normal(kx, (B, C, H, W), jnp.float32)
    params = init_params(kp, C)

    fwd = jax.jit(lambda inp: attn_block_forward(inp, params))
    out = jax.block_until_ready(fwd(x))

    ref = attn_block_reference(x, params)
    assert out.shape == (B, C, H, W)
    np.testing.assert_allclose(np.asarray(out), np.asarray(ref), rtol=2e-3, atol=2e-3)
    print("KERNEL_OK")
</pallas_src>

<mosaic_0001>
module attributes {stable_mosaic.version = 11 : i64} {
  func.func @_attn_block_kernel(%arg0: i32, %arg1: i32, %arg2: memref<1x64x256xf32, #tpu.memory_space<vmem>>, %arg3: memref<1x64x128xf32, #tpu.memory_space<vmem>>, %arg4: memref<64x64xf32, #tpu.memory_space<vmem>>, %arg5: memref<64x1xf32, #tpu.memory_space<vmem>>, %arg6: memref<64x1xf32, #tpu.memory_space<vmem>>, %arg7: memref<64x128xf32, #tpu.memory_space<vmem>>, %arg8: memref<1x128xf32, #tpu.memory_space<vmem>>, %arg9: memref<256x64xf32, #tpu.memory_space<vmem>>, %arg10: memref<256x1xf32, #tpu.memory_space<vmem>>, %arg11: memref<64x128xf32, #tpu.memory_space<vmem>>, %arg12: memref<64x1xf32, #tpu.memory_space<vmem>>, %arg13: memref<1x64x128xf32, #tpu.memory_space<vmem>>) attributes {dimension_semantics = [#tpu.dimension_semantics<parallel>, #tpu.dimension_semantics<parallel>], iteration_bounds = array<i64: 2, 2>, scalar_prefetch = 0 : i64, scratch_operands = 0 : i64, tpu.core_type = #tpu.core_type<tc>, window_params = [{transform_indices = @transform_0, window_bounds = array<i64: 1, 64, 256>}, {transform_indices = @transform_1, window_bounds = array<i64: 1, 64, 128>}, {pipeline_mode = #tpu.pipeline_mode<synchronous>, transform_indices = @transform_2, window_bounds = array<i64: 64, 64>}, {pipeline_mode = #tpu.pipeline_mode<synchronous>, transform_indices = @transform_3, window_bounds = array<i64: 64, 1>}, {pipeline_mode = #tpu.pipeline_mode<synchronous>, transform_indices = @transform_4, window_bounds = array<i64: 64, 1>}, {pipeline_mode = #tpu.pipeline_mode<synchronous>, transform_indices = @transform_5, window_bounds = array<i64: 64, 128>}, {pipeline_mode = #tpu.pipeline_mode<synchronous>, transform_indices = @transform_6, window_bounds = array<i64: 1, 128>}, {pipeline_mode = #tpu.pipeline_mode<synchronous>, transform_indices = @transform_7, window_bounds = array<i64: 256, 64>}, {pipeline_mode = #tpu.pipeline_mode<synchronous>, transform_indices = @transform_8, window_bounds = array<i64: 256, 1>}, {pipeline_mode = #tpu.pipeline_mode<synchronous>, transform_indices = @transform_9, window_bounds = array<i64: 64, 128>}, {pipeline_mode = #tpu.pipeline_mode<synchronous>, transform_indices = @transform_10, window_bounds = array<i64: 64, 1>}, {transform_indices = @transform_11, window_bounds = array<i64: 1, 64, 128>}]} {
    %c0 = arith.constant 0 : index
    %c0_0 = arith.constant 0 : index
    %c0_1 = arith.constant 0 : index
    %0 = vector.load %arg2[%c0, %c0_0, %c0_1] : memref<1x64x256xf32, #tpu.memory_space<vmem>>, vector<1x64x256xf32>
    %1 = vector.shape_cast %0 : vector<1x64x256xf32> to vector<64x256xf32>
    %c0_2 = arith.constant 0 : index
    %c0_3 = arith.constant 0 : index
    %2 = vector.load %arg4[%c0_2, %c0_3] : memref<64x64xf32, #tpu.memory_space<vmem>>, vector<64x64xf32>
    %cst = arith.constant dense<0.000000e+00> : vector<64x256xf32>
    %3 = tpu.matmul %2, %1, %cst {dimension_numbers = #tpu.dot_dimension_numbers<[1], [0], [0], [1], [0, 0, 1, 1], [], []>} : vector<64x64xf32>, vector<64x256xf32>, vector<64x256xf32> -> vector<64x256xf32>
    %cst_4 = arith.constant dense<0.000000e+00> : vector<64xf32>
    %4 = vector.multi_reduction <add>, %3, %cst_4 [1] : vector<64x256xf32> to vector<64xf32>
    %5 = vector.shape_cast %4 : vector<64xf32> to vector<64x1xf32>
    %6 = vector.broadcast %5 : vector<64x1xf32> to vector<64x256xf32>
    %7 = arith.subf %1, %6 : vector<64x256xf32>
    %8 = arith.mulf %7, %7 : vector<64x256xf32>
    %cst_5 = arith.constant dense<0.000000e+00> : vector<64x256xf32>
    %9 = tpu.matmul %2, %8, %cst_5 {dimension_numbers = #tpu.dot_dimension_numbers<[1], [0], [0], [1], [0, 0, 1, 1], [], []>} : vector<64x64xf32>, vector<64x256xf32>, vector<64x256xf32> -> vector<64x256xf32>
    %cst_6 = arith.constant dense<0.000000e+00> : vector<64xf32>
    %10 = vector.multi_reduction <add>, %9, %cst_6 [1] : vector<64x256xf32> to vector<64xf32>
    %11 = vector.shape_cast %10 : vector<64xf32> to vector<64x1xf32>
    %cst_7 = arith.constant 9.99999997E-7 : f32
    %12 = vector.broadcast %cst_7 : f32 to vector<64x1xf32>
    %13 = arith.addf %11, %12 : vector<64x1xf32>
    %14 = math.rsqrt %13 : vector<64x1xf32>
    %c0_8 = arith.constant 0 : index
    %c0_9 = arith.constant 0 : index
    %15 = vector.load %arg5[%c0_8, %c0_9] : memref<64x1xf32, #tpu.memory_space<vmem>>, vector<64x1xf32>
    %16 = arith.mulf %14, %15 : vector<64x1xf32>
    %c0_10 = arith.constant 0 : index
    %c0_11 = arith.constant 0 : index
    %17 = vector.load %arg6[%c0_10, %c0_11] : memref<64x1xf32, #tpu.memory_space<vmem>>, vector<64x1xf32>
    %18 = vector.broadcast %16 : vector<64x1xf32> to vector<64x256xf32>
    %19 = arith.mulf %7, %18 : vector<64x256xf32>
    %20 = vector.broadcast %17 : vector<64x1xf32> to vector<64x256xf32>
    %21 = arith.addf %19, %20 : vector<64x256xf32>
    %c0_12 = arith.constant 0 : index
    %c0_13 = arith.constant 0 : index
    %22 = vector.load %arg9[%c0_12, %c0_13] : memref<256x64xf32, #tpu.memory_space<vmem>>, vector<256x64xf32>
    %cst_14 = arith.constant dense<0.000000e+00> : vector<256x256xf32>
    %23 = tpu.matmul %22, %21, %cst_14 {dimension_numbers = #tpu.dot_dimension_numbers<[1], [0], [0], [1], [0, 0, 1, 1], [], []>} : vector<256x64xf32>, vector<64x256xf32>, vector<256x256xf32> -> vector<256x256xf32>
    %c0_15 = arith.constant 0 : index
    %c0_16 = arith.constant 0 : index
    %24 = vector.load %arg10[%c0_15, %c0_16] : memref<256x1xf32, #tpu.memory_space<vmem>>, vector<256x1xf32>
    %25 = vector.broadcast %24 : vector<256x1xf32> to vector<256x256xf32>
    %26 = arith.addf %23, %25 : vector<256x256xf32>
    %27 = vector.extract_strided_slice %26 {offsets = [0, 0], sizes = [128, 256], strides = [1, 1]} : vector<256x256xf32> to vector<128x256xf32>
    %28 = vector.extract_strided_slice %26 {offsets = [128, 0], sizes = [128, 256], strides = [1, 1]} : vector<256x256xf32> to vector<128x256xf32>
    %c0_17 = arith.constant 0 : index
    %c0_18 = arith.constant 0 : index
    %c0_19 = arith.constant 0 : index
    %29 = vector.load %arg3[%c0_17, %c0_18, %c0_19] : memref<1x64x128xf32, #tpu.memory_space<vmem>>, vector<1x64x128xf32>
    %30 = vector.shape_cast %29 : vector<1x64x128xf32> to vector<64x128xf32>
    %31 = vector.broadcast %5 : vector<64x1xf32> to vector<64x128xf32>
    %32 = arith.subf %30, %31 : vector<64x128xf32>
    %33 = vector.broadcast %16 : vector<64x1xf32> to vector<64x128xf32>
    %34 = arith.mulf %32, %33 : vector<64x128xf32>
    %35 = vector.broadcast %17 : vector<64x1xf32> to vector<64x128xf32>
    %36 = arith.addf %34, %35 : vector<64x128xf32>
    %37 = tpu.transpose %36, [1, 0] : vector<64x128xf32> -> vector<128x64xf32>
    %c0_20 = arith.constant 0 : index
    %c0_21 = arith.constant 0 : index
    %38 = vector.load %arg7[%c0_20, %c0_21] : memref<64x128xf32, #tpu.memory_space<vmem>>, vector<64x128xf32>
    %cst_22 = arith.constant dense<0.000000e+00> : vector<128x128xf32>
    %39 = tpu.matmul %37, %38, %cst_22 {dimension_numbers = #tpu.dot_dimension_numbers<[1], [0], [0], [1], [0, 0, 1, 1], [], []>} : vector<128x64xf32>, vector<64x128xf32>, vector<128x128xf32> -> vector<128x128xf32>
    %c0_23 = arith.constant 0 : index
    %c0_24 = arith.constant 0 : index
    %40 = vector.load %arg8[%c0_23, %c0_24] : memref<1x128xf32, #tpu.memory_space<vmem>>, vector<1x128xf32>
    %41 = vector.broadcast %40 : vector<1x128xf32> to vector<128x128xf32>
    %42 = arith.addf %39, %41 : vector<128x128xf32>
    %cst_25 = arith.constant dense<0.000000e+00> : vector<128x256xf32>
    %43 = tpu.matmul %42, %27, %cst_25 {dimension_numbers = #tpu.dot_dimension_numbers<[1], [0], [0], [1], [0, 0, 1, 1], [], []>} : vector<128x128xf32>, vector<128x256xf32>, vector<128x256xf32> -> vector<128x256xf32>
    %cst_26 = arith.constant dense<0xFF800000> : vector<128xf32>
    %44 = vector.multi_reduction <maximumf>, %43, %cst_26 [1] : vector<128x256xf32> to vector<128xf32>
    %45 = vector.shape_cast %44 : vector<128xf32> to vector<128x1xf32>
    %46 = vector.broadcast %45 : vector<128x1xf32> to vector<128x256xf32>
    %47 = arith.subf %43, %46 : vector<128x256xf32>
    %48 = math.exp %47 : vector<128x256xf32>
    %cst_27 = arith.constant dense<0.000000e+00> : vector<128x128xf32>
    %49 = tpu.matmul %48, %28, %cst_27 {dimension_numbers = #tpu.dot_dimension_numbers<[1], [1], [0], [0], [0, 0, 1, 0], [], []>} : vector<128x256xf32>, vector<128x256xf32>, vector<128x128xf32> -> vector<128x128xf32>
    %cst_28 = arith.constant dense<0.000000e+00> : vector<128xf32>
    %50 = vector.multi_reduction <add>, %48, %cst_28 [1] : vector<128x256xf32> to vector<128xf32>
    %51 = vector.shape_cast %50 : vector<128xf32> to vector<128x1xf32>
    %52 = tpu.reciprocal %51 {approx = true} : vector<128x1xf32> -> vector<128x1xf32>
    %53 = vector.broadcast %52 : vector<128x1xf32> to vector<128x128xf32>
    %54 = arith.mulf %49, %53 : vector<128x128xf32>
    %c0_29 = arith.constant 0 : index
    %c0_30 = arith.constant 0 : index
    %55 = vector.load %arg11[%c0_29, %c0_30] : memref<64x128xf32, #tpu.memory_space<vmem>>, vector<64x128xf32>
    %cst_31 = arith.constant dense<0.000000e+00> : vector<64x128xf32>
    %56 = tpu.matmul %55, %54, %cst_31 {dimension_numbers = #tpu.dot_dimension_numbers<[1], [1], [0], [0], [0, 0, 1, 0], [], []>} : vector<64x128xf32>, vector<128x128xf32>, vector<64x128xf32> -> vector<64x128xf32>
    %57 = arith.addf %36, %56 : vector<64x128xf32>
    %c0_32 = arith.constant 0 : index
    %c0_33 = arith.constant 0 : index
    %58 = vector.load %arg12[%c0_32, %c0_33] : memref<64x1xf32, #tpu.memory_space<vmem>>, vector<64x1xf32>
    %59 = vector.broadcast %58 : vector<64x1xf32> to vector<64x128xf32>
    %60 = arith.addf %57, %59 : vector<64x128xf32>
    %c0_34 = arith.constant 0 : index
    %c0_35 = arith.constant 0 : index
    %c0_36 = arith.constant 0 : index
    %61 = vector.load %arg13[%c0_34, %c0_35, %c0_36] : memref<1x64x128xf32, #tpu.memory_space<vmem>>, vector<1x64x128xf32>
    %62 = vector.shape_cast %61 : vector<1x64x128xf32> to vector<64x128xf32>
    %63 = vector.shape_cast %60 : vector<64x128xf32> to vector<1x64x128xf32>
    tpu.vector_store %arg13[%c0_34, %c0_35, %c0_36], %63 {strides = array<i32>} : memref<1x64x128xf32, #tpu.memory_space<vmem>>, vector<1x64x128xf32>,
    return
  }
  func.func @transform_0(%arg0: i32, %arg1: i32) -> (i32, i32, i32) {
    %c0_i32 = arith.constant 0 : i32
    %c0_i32_0 = arith.constant 0 : i32
    %c0_i32_1 = arith.constant 0 : i32
    return %arg0, %c0_i32, %c0_i32_0 : i32, i32, i32
  }
  func.func @transform_1(%arg0: i32, %arg1: i32) -> (i32, i32, i32) {
    %c0_i32 = arith.constant 0 : i32
    %c0_i32_0 = arith.constant 0 : i32
    return %arg0, %c0_i32, %arg1 : i32, i32, i32
  }
  func.func @transform_2(%arg0: i32, %arg1: i32) -> (i32, i32) {
    %c0_i32 = arith.constant 0 : i32
    %c0_i32_0 = arith.constant 0 : i32
    %c0_i32_1 = arith.constant 0 : i32
    return %c0_i32, %c0_i32_0 : i32, i32
  }
  func.func @transform_3(%arg0: i32, %arg1: i32) -> (i32, i32) {
    %c0_i32 = arith.constant 0 : i32
    %c0_i32_0 = arith.constant 0 : i32
    %c0_i32_1 = arith.constant 0 : i32
    return %c0_i32, %c0_i32_0 : i32, i32
  }
  func.func @transform_4(%arg0: i32, %arg1: i32) -> (i32, i32) {
    %c0_i32 = arith.constant 0 : i32
    %c0_i32_0 = arith.constant 0 : i32
    %c0_i32_1 = arith.constant 0 : i32
    return %c0_i32, %c0_i32_0 : i32, i32
  }
  func.func @transform_5(%arg0: i32, %arg1: i32) -> (i32, i32) {
    %c0_i32 = arith.constant 0 : i32
    %c0_i32_0 = arith.constant 0 : i32
    %c0_i32_1 = arith.constant 0 : i32
    return %c0_i32, %c0_i32_0 : i32, i32
  }
  func.func @transform_6(%arg0: i32, %arg1: i32) -> (i32, i32) {
    %c0_i32 = arith.constant 0 : i32
    %c0_i32_0 = arith.constant 0 : i32
    %c0_i32_1 = arith.constant 0 : i32
    return %c0_i32, %c0_i32_0 : i32, i32
  }
  func.func @transform_7(%arg0: i32, %arg1: i32) -> (i32, i32) {
    %c0_i32 = arith.constant 0 : i32
    %c0_i32_0 = arith.constant 0 : i32
    %c0_i32_1 = arith.constant 0 : i32
    return %c0_i32, %c0_i32_0 : i32, i32
  }
  func.func @transform_8(%arg0: i32, %arg1: i32) -> (i32, i32) {
    %c0_i32 = arith.constant 0 : i32
    %c0_i32_0 = arith.constant 0 : i32
    %c0_i32_1 = arith.constant 0 : i32
    return %c0_i32, %c0_i32_0 : i32, i32
  }
  func.func @transform_9(%arg0: i32, %arg1: i32) -> (i32, i32) {
    %c0_i32 = arith.constant 0 : i32
    %c0_i32_0 = arith.constant 0 : i32
    %c0_i32_1 = arith.constant 0 : i32
    return %c0_i32, %c0_i32_0 : i32, i32
  }
  func.func @transform_10(%arg0: i32, %arg1: i32) -> (i32, i32) {
    %c0_i32 = arith.constant 0 : i32
    %c0_i32_0 = arith.constant 0 : i32
    %c0_i32_1 = arith.constant 0 : i32
    return %c0_i32, %c0_i32_0 : i32, i32
  }
  func.func @transform_11(%arg0: i32, %arg1: i32) -> (i32, i32, i32) {
    %c0_i32 = arith.constant 0 : i32
    %c0_i32_0 = arith.constant 0 : i32
    return %arg0, %c0_i32, %arg1 : i32, i32, i32
  }
}

</mosaic_0001>

<bundles_post_ra>
// kernel: _lambda_.1
= control target key start
LH: loop header
LB: loop body
LE: loop exit
PB: predicated region body
PF: predicated region fallthrough
CT: control target
= control target key end

     0   :  { %s4608_s0 = inlined_call_operand.vmem [shape: f32[2,64,256], index: 0, kind: input, shape index: {}, may-alias: {0,1}]   ;;  %s4609_s1 = inlined_call_operand.vmem [shape: f32[2,64,256], index: 1, kind: input, shape index: {}, may-alias: {0,1}]   ;;  %s4610_s2 = inlined_call_operand.hbm [shape: f32[64,64], index: 2, kind: input, shape index: {}]   ;;  %s4611_s3 = inlined_call_operand.vmem [shape: f32[64,1], index: 3, kind: input, shape index: {}]   ;;  %s4612_s4 = inlined_call_operand.vmem [shape: f32[64,1], index: 4, kind: input, shape index: {}]   ;;  %s4613_s5 = inlined_call_operand.vmem [shape: f32[64,128], index: 5, kind: input, shape index: {}]   ;;  %s4614_s6 = inlined_call_operand.vmem [shape: f32[1,128], index: 6, kind: input, shape index: {}]   ;;  %s4615_s7 = inlined_call_operand.vmem [shape: f32[256,64], index: 7, kind: input, shape index: {}]   ;;  %s4616_s8 = inlined_call_operand.vmem [shape: f32[256,1], index: 8, kind: input, shape index: {}]   ;;  %s4617_s9 = inlined_call_operand.vmem [shape: f32[64,128], index: 9, kind: input, shape index: {}]   ;;  %s4618_s10 = inlined_call_operand.hbm [shape: f32[64,1], index: 10, kind: input, shape index: {}]   ;;  %s4619_s11 = inlined_call_operand.vmem [shape: f32[2,64,256], index: 11, kind: output, shape index: {}]  }
   0x1   :  { %4624 = sst [smem:[#allocation15_spill]] %s4610_s2 }
   0x2   :  { %4625 = sst [smem:[#allocation16_spill]] %s4617_s9 }
   0x3   :  { %4626 = sst [smem:[#allocation17_spill]] %s4619_s11 }
   0x4   :  { %16 = vsyncpa [#allocation4], 0 }
   0x5   :  { %17 = vsyncpa [#allocation6], 0  ;;  %s3357_s17 = smov 0   ;;  %s3359_s18 = smov 0  }
   0x6   :  { %s3361_s19 = smov 0   ;;  %s3363_s20 = smov 0  }
   0x7   :  { %s3365_s21 = smov 0   ;;  %s3367_s22 = smov 0  }
   0x8   :  { %s3369_s23 = smov 0  }
   0x9 LB: > { %4627 = sst [smem:[#allocation10_spill]] %s3273_s19  ;;  %s2761_s24 = sadd.s32 4294967295, %s3289_s23   ;;  %s3289_s23 = sphi %s3369_s23, %s23_s23   ;;  %s3285_s22 = sphi %s3367_s22, %s4650_s22   ;;  %s3281_s21 = sphi %s3365_s21, %s4649_s21   ;;  %s3277_s20 = sphi %s3363_s20, %s4648_s20   ;;  %s3273_s19 = sphi %s3361_s19, %s4647_s19   ;;  %s3269_s18 = sphi %s3359_s18, %s4646_s18   ;;  %s3265_s17 = sphi %s3357_s17, %s4645_s17  }
   0xa   : > { %s32_s25 = sadd.s32 1, %s3281_s21  ;;  %s35_s26 = sadd.s32 1, %s3285_s22 }
   0xb   : > { %p33_p0 = scmp.ge.s32.totalorder %s32_s25, 2  ;;  %s70_s27 = sadd.s32 1, %s3269_s18 }
   0xc   : > { %p77_p1 = scmp.ne.s32.totalorder %s3269_s18, %s3265_s17  ;;  %p78_p2 = scmp.eq.s32.totalorder %s3289_s23, 0 }
   0xd   : > { %s4652_s25 = smov (%p33_p0, %s32_s25), 0  ;;  %s4654_s26 = smov (!%p33_p0, %s35_s26), %s3285_s22 }
   0xe   : > { %4628 = sst [smem:[#allocation11_spill]] %s4652_s25  ;;  %s66_s28 = ssub.s32 %s3281_s21, %s4652_s25 }
   0xf   : > { %p37_p3 = scmp.ge.s32.totalorder %s4654_s26, 2  ;;  %p298_p4 = scmp.eq.s32.totalorder %s2761_s24, 3 }
  0x10   : > { %p3404_p5 = por %p78_p2, %p77_p1  ;;  %p2763_p6 = scmp.ge.s32.totalorder %s3289_s23, 1 }
  0x11   : > { %s4656_s26 = smov (%p37_p3, %s4654_s26), 0  ;;  %p3411_p7 = por %p298_p4, %p77_p1 }
  0x12   : > { %4630 = sst [smem:[#allocation12_spill]] %s4656_s26  ;;  %p311_p8 = scmp.lt.s32.totalorder %s3289_s23, 5 }
  0x13   : > { %s4631_s30 = scalar_select %p3411_p7, 1, 0 }
  0x14   : > { %s65_s12 = ssub.s32 %s3285_s22, %s4656_s26  ;;  %p3418_p9 = pnand %p2763_p6, %p311_p8 }
  0x15   : > { %4632 = sst [smem:[#allocation13_spill]] %s4631_s30  ;;  %s67_s13 = sor.u32 %s66_s28, %s65_s12 }
  0x16   : > { %p68_p10 = scmp.eq.s32.totalorder %s67_s13, 0  ;;  %p3422_p11 = scmp.eq.s32.totalorder %s2761_s24, 0 }
  0x17   : > { %p2988_p12 = pneg %p3418_p9  ;;  %s3291_s25 = smov [#allocation3]  }
  0x18   : > { %s3429_s16 = scalar_select %p68_p10, %s3269_s18, %s70_s27  }
  0x19   : > { %s323_s11 = sshll.u32 %s3291_s25, 4  ;;  %p3433_p13 = pnand %p3422_p11, %p2988_p12  ;;  %s324_s11 = int_to_ptr.vmem [resolvable:$true] %s323_s11 }
  0x1a   : > { %4635 = sst [smem:[#allocation14_spill]] %s3429_s16  ;;  %s3186_s24 = scalar_lea.vmem %s324_s11, 1024 }
  0x1b   : > { %p3177_p0 = pneg %p3433_p13  ;;  %p3187_p1 = scmp.ne.s32.totalorder %s324_s11, %s3186_s24 }
  0x1c   : > { %p3194_p4 = scmp.lt.s32.totalorder %s324_s11, %s324_s11  ;;  %p3195_p6 = scmp.lt.s32.totalorder %s3186_s24, %s3186_s24 }
  0x1d   : > { %p3189_p2 = pnand %p3187_p1, %p3177_p0 }
  0x1e   : > { %p3196_p8 = por %p3195_p6, %p3194_p4 }
  0x1f   : > { %p3190_p3 = pneg %p3189_p2 }
  0x21   : > { %p3197_p10 = pnand %p3196_p8, %p3190_p3 }
  0x23   : > { %3200 = shalt.err (!%p3197_p10)
}
  0x24   : > { %s3292_s25 = smov 128   ;;  %s3293_s27 = smov 8  }
  0x25   : > { %s4637_s2 = sld [smem:[#allocation15_spill]]  ;;  %s3294_s26 = smov [#allocation5]  }
  0x26   : > { %s357_s16 = sshll.u32 %s3294_s26, 4  ;;  %s358_s16 = int_to_ptr.vmem [resolvable:$true] %s357_s16 }
  0x27   : > { %s3212_s19 = scalar_lea.vmem %s358_s16, 1024  ;;  %p3220_p3 = scmp.lt.s32.totalorder %s358_s16, %s358_s16 }
  0x28   : > { %p3213_p12 = scmp.ne.s32.totalorder %s358_s16, %s3212_s19  ;;  %p3221_p4 = scmp.lt.s32.totalorder %s3212_s19, %s3212_s19 }
  0x2a   : > { %p3215_p1 = pnand %p3213_p12, %p3177_p0  ;;  %p3222_p6 = por %p3221_p4, %p3220_p3 }
  0x2b   : > { %2991 = dma.hbm_to_vmem [thread:$0]  (!%p3433_p13), %s4637_s2, 1024, %s324_s11, [#allocation4], %s3292_s25, %s3292_s25, %s3293_s27  }
  0x2c   : > { %p3216_p2 = pneg %p3215_p1 }
  0x2e   : > { %p3223_p8 = pnand %p3222_p6, %p3216_p2 }
  0x30   : > { %3226 = shalt.err (!%p3223_p8)
}
  0x31   : > { %2994 = dma.hbm_to_vmem [thread:$0]  (!%p3433_p13), %s4618_s10, 1024, %s358_s16, [#allocation6], %s3292_s25, %s3292_s25, %s3293_s27  }
  0x32   : > { %p2766_p10 = scmp.ge.s32.totalorder %s3289_s23, 4 }
  0x34   : > { %367 = sbr.rel (%p2766_p10) target bundleno = 67 (0x43), region = 52 }
  0x39   : > { %378 = sbr.rel (!%p3404_p5) target bundleno = 67 (0x43), region = 60  ;;  %s380_s11 = sand.u32 (%p3404_p5), 1, %s3269_s18  }
  0x3a   : > { %s2768_s19 = sshll.u32 (%p3404_p5), %s3285_s22, 4  ;;  %s2767_s26 = sshll.u32 (%p3404_p5), %s380_s11, 6 }
  0x3b   : > { %s384_s12 = sadd.s32 (%p3404_p5), %s3281_s21, %s2768_s19  ;;  %s382_s30 = scalar_lea.vmem (%p3404_p5), [#allocation2], %s2767_s26 }
  0x3c   : > { %s2769_s13 = sshll.u32 (%p3404_p5), %s384_s12, 3 }
  0x3d   : > { %s386_s9 = scalar_lea.vmem (%p3404_p5), %s4609_s1, %s2769_s13 }
  0x3e   : > { %v429_v0 = vld [vmem:[%s386_s9] sm:$0xff]  ;;  %v431_v1 = vld [vmem:[%s386_s9 + $0x10] sm:$0xff] }
  0x3f   : > { %v433_v2 = vld [vmem:[%s386_s9 + $0x20] sm:$0xff]  ;;  %430 = vst [vmem:[%s382_s30] sm:$0xff] %v429_v0  ;;  %432 = vst [vmem:[%s382_s30 + $0x8] sm:$0xff] %v431_v1  ;;  %v435_v3 = vld [vmem:[%s386_s9 + $0x30] sm:$0xff] }
  0x40   : > { %434 = vst [vmem:[%s382_s30 + $0x10] sm:$0xff] %v433_v2  ;;  %v437_v4 = vld [vmem:[%s386_s9 + $0x40] sm:$0xff]  ;;  %v439_v5 = vld [vmem:[%s386_s9 + $0x50] sm:$0xff]  ;;  %436 = vst [vmem:[%s382_s30 + $0x18] sm:$0xff] %v435_v3 }
  0x41   : > { %438 = vst [vmem:[%s382_s30 + $0x20] sm:$0xff] %v437_v4  ;;  %440 = vst [vmem:[%s382_s30 + $0x28] sm:$0xff] %v439_v5  ;;  %v441_v6 = vld [vmem:[%s386_s9 + $0x60] sm:$0xff]  ;;  %v443_v7 = vld [vmem:[%s386_s9 + $0x70] sm:$0xff] }
  0x42   : > { %442 = vst [vmem:[%s382_s30 + $0x30] sm:$0xff] %v441_v6  ;;  %444 = vst [vmem:[%s382_s30 + $0x38] sm:$0xff] %v443_v7 }
  0x43 PF: > { %453 = sbr.rel (%p3418_p9) target bundleno = 2283 (0x8eb), region = 98  ;;  %s456_s2 = sand.u32 (!%p3418_p9), 1, %s3265_s17  }
  0x44   : > { %s3467_s29 = sshll.u32 (!%p3418_p9), %s456_s2, 6 }
  0x45   : > { %s3470_s16 = scalar_lea.vmem (!%p3418_p9), [#allocation2], %s3467_s29 }
  0x48   : > { %3256 = dma.done.wait (%p3422_p11), [#allocation4], 1024  }
  0x49   : > { %3258 = vsyncadd (%p3422_p11), [#allocation4], 4294966272 }
  0x4a   : > { %3260 = dma.done.wait (%p3422_p11), [#allocation6], 1024  }
  0x4b   : > { %3262 = vsyncadd (%p3422_p11), [#allocation6], 4294966272  ;;  %p507_p5 = scmp.lt.s32.totalorder %s3277_s20, 1  ;;  %v3295_v8 = vmov 0.0   ;;  %v3533_v25 = vld [vmem:[#allocation3] sm:$0xff]  ;;  %vm536_vm0 = vcmask 523264  }
  0x4c   : > { %625 = vmatprep.mubr.f32.mxu0 %v3295_v8  ;;  %794 = vmatprep.mubr.f32.mxu1 %v3295_v8  ;;  %v3540_v26 = vld [vmem:[#allocation3 + $0x8] sm:$0xff]  ;;  %v3545_v27 = vld [vmem:[#allocation3 + $0x10] sm:$0xff]  ;;  %v3550_v28 = vld [vmem:[#allocation3 + $0x18] sm:$0xff]  ;;  %s4556_s2 = scalar_lea.vmem [#allocation7], %s3467_s29  ;;  %s2843_s14 = sshll.u32 (%p3411_p7), %s3277_s20, 4 }
  0x4d   : > { %s508_s9 = scalar_select %p507_p5, %s3277_s20, 1  ;;  %v3555_v29 = vld [vmem:[#allocation3 + $0x20] sm:$0xff]  ;;  %v3560_v30 = vld [vmem:[#allocation3 + $0x28] sm:$0xff]  ;;  %v3565_v31 = vld [vmem:[#allocation3 + $0x30] sm:$0xff] }
  0x4e   : > { %v3570_v32 = vld [vmem:[#allocation3 + $0x38] sm:$0xff]  ;;  %s4641_s11 = sld [smem:[#allocation17_spill]] (%p3411_p7) }
  0x4f   : > { %s2847_s17 = sshll.u32 %s508_s9, 7  ;;  %s4638_s9 = sld [smem:[#allocation16_spill]] }
  0x50   : > { %s511_s27 = scalar_lea.vmem %s4608_s0, %s2847_s17  ;;  %s4640_s17 = sld [smem:[#allocation10_spill]] (%p3411_p7) }
  0x51   : > { %v3487_v9 = vld [vmem:[%s511_s27 + $0x78] sm:$0xff]  ;;  %v3489_v10 = vld [vmem:[%s511_s27 + $0x70] sm:$0xff]  ;;  %v3491_v11 = vld [vmem:[%s511_s27 + $0x68] sm:$0xff] }
  0x52   : > { %577 = vmatprep.subr.mxu0 %v3487_v9  ;;  %v3494_v12 = vld [vmem:[%s511_s27 + $0x60] sm:$0xff]  ;;  %v3497_v13 = vld [vmem:[%s511_s27 + $0x58] sm:$0xff]  ;;  %v3500_v14 = vld [vmem:[%s511_s27 + $0x50] sm:$0xff] }
  0x53   : > { %578 = vmatpush1.msra.mxu0 %v3489_v10  ;;  %v3503_v15 = vld [vmem:[%s511_s27 + $0x48] sm:$0xff]  ;;  %v3506_v16 = vld [vmem:[%s511_s27 + $0x40] sm:$0xff]  ;;  %v3509_v17 = vld [vmem:[%s511_s27 + $0x38] sm:$0xff] }
  0x54   : > { %579 = vmatprep.subr.mxu0 %v3491_v11  ;;  %v3512_v18 = vld [vmem:[%s511_s27 + $0x30] sm:$0xff]  ;;  %v3515_v19 = vld [vmem:[%s511_s27 + $0x28] sm:$0xff]  ;;  %v3518_v20 = vld [vmem:[%s511_s27 + $0x20] sm:$0xff] }
  0x55   : > { %580 = vmatpush1.msra.mxu0 %v3494_v12  ;;  %v3521_v21 = vld [vmem:[%s511_s27 + $0x18] sm:$0xff]  ;;  %v3524_v22 = vld [vmem:[%s511_s27 + $0x10] sm:$0xff]  ;;  %v3527_v23 = vld [vmem:[%s511_s27 + $0x8] sm:$0xff] }
  0x56   : > { %581 = vmatprep.subr.mxu0 %v3497_v13  ;;  %v3530_v24 = vld [vmem:[%s511_s27] sm:$0xff]  ;;  %s2591_s25 = sadd.s32 (%p3411_p7), %s4640_s17, %s2843_s14 }
  0x57   : > { %582 = vmatpush1.msra.mxu0 %v3500_v14  ;;  %s2844_s27 = sshll.u32 (%p3411_p7), %s2591_s25, 3 }
  0x58   : > { %583 = vmatprep.subr.mxu0 %v3503_v15  ;;  %s2593_s19 = scalar_lea.vmem (%p3411_p7), %s4641_s11, %s2844_s27 }
  0x59   : > { %584 = vmatpush1.msra.mxu0 %v3506_v16 }
  0x5a   : > { %585 = vmatprep.subr.mxu0 %v3509_v17 }
  0x5b   : > { %586 = vmatpush1.msra.mxu0 %v3512_v18 }
  0x5c   : > { %587 = vmatprep.subr.mxu0 %v3515_v19 }
  0x5d   : > { %588 = vmatpush1.msra.mxu0 %v3518_v20 }
  0x5e   : > { %589 = vmatprep.subr.mxu0 %v3521_v21 }
  0x5f   : > { %590 = vmatpush1.msra.mxu0 %v3524_v22 }
  0x60   : > { %591 = vmatprep.subr.mxu0 %v3527_v23 }
  0x61   : > { %592 = vmatpush1.msra.mxu0 %v3530_v24 }
  0x62   : > { %2777 = vmatmul.mubr.msk.f32.vlgmr.msra.gmra.mxu0 %vm536_vm0, %v3533_v25 }
  0x63   : > { %631 = vmatprep.mubr.f32.mxu0 %v3295_v8 }
  0x66   : > { %2778 = vmatmul.mubr.msk.f32.gmra.mxu0 %vm536_vm0, %v3540_v26 }
  0x67   : > { %637 = vmatprep.mubr.f32.mxu0 %v3295_v8 }
  0x6a   : > { %2779 = vmatmul.mubr.msk.f32.gmra.mxu0 %vm536_vm0, %v3545_v27 }
  0x6b   : > { %643 = vmatprep.mubr.f32.mxu0 %v3295_v8 }
  0x6e   : > { %2780 = vmatmul.mubr.msk.f32.gmra.mxu0 %vm536_vm0, %v3550_v28 }
  0x6f   : > { %649 = vmatprep.mubr.f32.mxu0 %v3295_v8 }
  0x72   : > { %2781 = vmatmul.mubr.msk.f32.gmra.mxu0 %vm536_vm0, %v3555_v29 }
  0x73   : > { %655 = vmatprep.mubr.f32.mxu0 %v3295_v8 }
  0x76   : > { %2782 = vmatmul.mubr.msk.f32.gmra.mxu0 %vm536_vm0, %v3560_v30 }
  0x77   : > { %661 = vmatprep.mubr.f32.mxu0 %v3295_v8 }
  0x7a   : > { %2783 = vmatmul.mubr.msk.f32.gmra.mxu0 %vm536_vm0, %v3565_v31 }
  0x7b   : > { %667 = vmatprep.mubr.f32.mxu0 %v3295_v8 }
  0x7e   : > { %2784 = vmatmul.mubr.msk.f32.gmra.mxu0 %vm536_vm0, %v3570_v32 }
  0x7f   : > { %1403 = vmatprep.mubr.f32.mxu0 %v3295_v8 }
 0x122   : > { %v627_v33 = vpop.f32.mrf.mxu0 }
 0x124   : > { %v629_v34 = vpop.f32.mrf.mxu0 }
 0x125   : > { %v674_v53 = vadd.f32 %v629_v34, %v627_v33 }
 0x126   : > { %v633_v35 = vpop.f32.mrf.mxu0 }
 0x128   : > { %v635_v36 = vpop.f32.mrf.mxu0 }
 0x129   : > { %v677_v56 = vadd.f32 %v635_v36, %v633_v35 }
 0x12a   : > { %v639_v37 = vpop.f32.mrf.mxu0 }
 0x12c   : > { %v641_v38 = vpop.f32.mrf.mxu0 }
 0x12d   : > { %v680_v51 = vadd.f32 %v641_v38, %v639_v37 }
 0x12e   : > { %v645_v39 = vpop.f32.mrf.mxu0 }
 0x130   : > { %v647_v40 = vpop.f32.mrf.mxu0 }
 0x131   : > { %v683_v55 = vadd.f32 %v647_v40, %v645_v39 }
 0x132   : > { %v651_v41 = vpop.f32.mrf.mxu0 }
 0x134   : > { %v653_v42 = vpop.f32.mrf.mxu0 }
 0x135   : > { %v686_v48 = vadd.f32 %v653_v42, %v651_v41 }
 0x136   : > { %v657_v43 = vpop.f32.mrf.mxu0 }
 0x138   : > { %v659_v44 = vpop.f32.mrf.mxu0 }
 0x139   : > { %v689_v45 = vadd.f32 %v659_v44, %v657_v43 }
 0x13a   : > { %v663_v46 = vpop.f32.mrf.mxu0 }
 0x13b   : > { %690 = vadd.xlane.f32.xlu1 %v689_v45 }
 0x13c   : > { %v665_v47 = vpop.f32.mrf.mxu0 }
 0x13d   : > { %v692_v54 = vadd.f32 %v665_v47, %v663_v46 }
 0x13e   : > { %v669_v49 = vpop.f32.mrf.mxu0 }
 0x13f   : > { %687 = vadd.xlane.f32.xlu1 %v686_v48 }
 0x140   : > { %v671_v50 = vpop.f32.mrf.mxu0 }
 0x141   : > { %v695_v52 = vadd.f32 %v671_v50, %v669_v49 }
 0x143   : > { %681 = vadd.xlane.f32.xlu1 %v680_v51  ;;  %696 = vadd.xlane.f32.xlu0 %v695_v52 }
 0x147   : > { %675 = vadd.xlane.f32.xlu1 %v674_v53  ;;  %693 = vadd.xlane.f32.xlu0 %v692_v54 }
 0x14b   : > { %684 = vadd.xlane.f32.xlu0 %v683_v55 }
 0x14f   : > { %678 = vadd.xlane.f32.xlu0 %v677_v56 }
 0x1c4   : > { %v3575_v57 = vpop.xlane.xlu1 %690 }
 0x1c5   : > { %v3601_v2 = vsub.f32 %v3497_v13, %v3575_v57  ;;  %v3609_v4 = vsub.f32 %v3500_v14, %v3575_v57 }
 0x1c7   : > { %v725_v13 = vmul.f32 %v3601_v2, %v3601_v2 }
 0x1c8   : > { %v3579_v59 = vpop.xlane.xlu1 %687 }
 0x1c9   : > { %v3617_v7 = vsub.f32 %v3503_v15, %v3579_v59  ;;  %v724_v15 = vmul.f32 %v3609_v4, %v3609_v4 }
 0x1cc   : > { %v3577_v58 = vpop.xlane.xlu0 %696  ;;  %v3611_v5 = vpop.xlane.xlu1 %681 }
 0x1cd   : > { %v3583_v60 = vsub.f32 %v3487_v9, %v3577_v58  ;;  %v3587_v61 = vsub.f32 %v3489_v10, %v3577_v58  ;;  %v3649_v34 = vsub.f32 %v3518_v20, %v3611_v5 }
 0x1cf   : > { %v729_v63 = vmul.f32 %v3583_v60, %v3583_v60  ;;  %v728_v0 = vmul.f32 %v3587_v61, %v3587_v61 }
 0x1d0   : > { %v3589_v62 = vpop.xlane.xlu0 %693 }
 0x1d1   : > { %v3597_v1 = vsub.f32 %v3494_v12, %v3589_v62  ;;  %v3605_v3 = vsub.f32 %v3491_v11, %v3589_v62  ;;  %746 = vmatprep.subr.mxu1 %v729_v63  ;;  %v3625_v11 = vsub.f32 %v3506_v16, %v3579_v59  ;;  %v3641_v16 = vsub.f32 %v3515_v19, %v3611_v5 }
 0x1d2   : > { %747 = vmatpush1.msra.mxu1 %v728_v0  ;;  %v3296_v63 = vmov 0  }
 0x1d3   : > { %v726_v6 = vmul.f32 %v3597_v1, %v3597_v1  ;;  %v727_v10 = vmul.f32 %v3605_v3, %v3605_v3  ;;  %v722_v35 = vmul.f32 %v3625_v11, %v3625_v11  ;;  %3061 = vset.pattern.permute.xlu1 %v3296_v63  ;;  %3062 = vset.pattern.permute.xlu0 %v3296_v63 }
 0x1d4   : > { %v3619_v9 = vpop.xlane.xlu0 %684 }
 0x1d5   : > { %v3629_v12 = vsub.f32 %v3509_v17, %v3619_v9  ;;  %748 = vmatprep.subr.mxu1 %v727_v10  ;;  %v3635_v14 = vsub.f32 %v3512_v18, %v3619_v9  ;;  %v723_v17 = vmul.f32 %v3617_v7, %v3617_v7  ;;  %v3651_v18 = vpop.xlane.xlu1 %675  ;;  %v905_v10 = vld [vmem:[%s4612_s4 + $0x30] sm:$0xff] }
 0x1d6   : > { %749 = vmatpush1.msra.mxu1 %v726_v6  ;;  %v3669_v38 = vsub.f32 %v3527_v23, %v3651_v18  ;;  %v3675_v39 = vsub.f32 %v3530_v24, %v3651_v18  ;;  %v906_v6 = vld [vmem:[%s4612_s4 + $0x38] sm:$0xff] }
 0x1d7   : > { %750 = vmatprep.subr.mxu1 %v725_v13  ;;  %v721_v36 = vmul.f32 %v3629_v12, %v3629_v12  ;;  %v720_v20 = vmul.f32 %v3635_v14, %v3635_v14  ;;  %v904_v13 = vld [vmem:[%s4612_s4 + $0x28] sm:$0xff] }
 0x1d8   : > { %v3643_v33 = vpop.xlane.xlu0 %678  ;;  %751 = vmatpush1.msra.mxu1 %v724_v15  ;;  %v715_v41 = vmul.f32 %v3669_v38, %v3669_v38  ;;  %v714_v24 = vmul.f32 %v3675_v39, %v3675_v39  ;;  %v903_v15 = vld [vmem:[%s4612_s4 + $0x20] sm:$0xff] }
 0x1d9   : > { %v3657_v19 = vsub.f32 %v3521_v21, %v3643_v33  ;;  %752 = vmatprep.subr.mxu1 %v723_v17  ;;  %v3663_v37 = vsub.f32 %v3524_v22, %v3643_v33  ;;  %v719_v21 = vmul.f32 %v3641_v16, %v3641_v16  ;;  %v718_v22 = vmul.f32 %v3649_v34, %v3649_v34 }
 0x1da   : > { %753 = vmatpush1.msra.mxu1 %v722_v35 }
 0x1db   : > { %754 = vmatprep.subr.mxu1 %v721_v36  ;;  %v717_v40 = vmul.f32 %v3657_v19, %v3657_v19  ;;  %v716_v23 = vmul.f32 %v3663_v37, %v3663_v37 }
 0x1dc   : > { %755 = vmatpush1.msra.mxu1 %v720_v20 }
 0x1dd   : > { %756 = vmatprep.subr.mxu1 %v719_v21 }
 0x1de   : > { %757 = vmatpush1.msra.mxu1 %v718_v22 }
 0x1df   : > { %758 = vmatprep.subr.mxu1 %v717_v40 }
 0x1e0   : > { %759 = vmatpush1.msra.mxu1 %v716_v23 }
 0x1e1   : > { %760 = vmatprep.subr.mxu1 %v715_v41 }
 0x1e2   : > { %761 = vmatpush1.msra.mxu1 %v714_v24 }
 0x1e3   : > { %2785 = vmatmul.mubr.msk.f32.vlgmr.msra.gmra.mxu1 %vm536_vm0, %v3533_v25 }
 0x1e4   : > { %800 = vmatprep.mubr.f32.mxu1 %v3295_v8 }
 0x1e7   : > { %2786 = vmatmul.mubr.msk.f32.gmra.mxu1 %vm536_vm0, %v3540_v26 }
 0x1e8   : > { %806 = vmatprep.mubr.f32.mxu1 %v3295_v8 }
 0x1eb   : > { %2787 = vmatmul.mubr.msk.f32.gmra.mxu1 %vm536_vm0, %v3545_v27 }
 0x1ec   : > { %812 = vmatprep.mubr.f32.mxu1 %v3295_v8 }
 0x1ef   : > { %2788 = vmatmul.mubr.msk.f32.gmra.mxu1 %vm536_vm0, %v3550_v28 }
 0x1f0   : > { %818 = vmatprep.mubr.f32.mxu1 %v3295_v8 }
 0x1f3   : > { %2789 = vmatmul.mubr.msk.f32.gmra.mxu1 %vm536_vm0, %v3555_v29 }
 0x1f4   : > { %824 = vmatprep.mubr.f32.mxu1 %v3295_v8 }
 0x1f7   : > { %2790 = vmatmul.mubr.msk.f32.gmra.mxu1 %vm536_vm0, %v3560_v30 }
 0x1f8   : > { %830 = vmatprep.mubr.f32.mxu1 %v3295_v8 }
 0x1fb   : > { %2791 = vmatmul.mubr.msk.f32.gmra.mxu1 %vm536_vm0, %v3565_v31 }
 0x1fc   : > { %836 = vmatprep.mubr.f32.mxu1 %v3295_v8 }
 0x1ff   : > { %2792 = vmatmul.mubr.msk.f32.gmra.mxu1 %vm536_vm0, %v3570_v32 }
 0x2a3   : > { %v796_v25 = vpop.f32.mrf.mxu1 }
 0x2a5   : > { %v798_v26 = vpop.f32.mrf.mxu1 }
 0x2a6   : > { %v843_v55 = vadd.f32 %v798_v26, %v796_v25 }
 0x2a7   : > { %v802_v27 = vpop.f32.mrf.mxu1 }
 0x2a9   : > { %v804_v28 = vpop.f32.mrf.mxu1 }
 0x2aa   : > { %v846_v0 = vadd.f32 %v804_v28, %v802_v27 }
 0x2ab   : > { %v808_v29 = vpop.f32.mrf.mxu1 }
 0x2ad   : > { %v810_v42 = vpop.f32.mrf.mxu1 }
 0x2ae   : > { %v849_v53 = vadd.f32 %v810_v42, %v808_v29  ;;  %v890_v42 = vld [vmem:[%s4611_s3 + $0x38] sm:$0xff] }
 0x2af   : > { %v814_v43 = vpop.f32.mrf.mxu1 }
 0x2b1   : > { %v816_v44 = vpop.f32.mrf.mxu1 }
 0x2b2   : > { %v852_v56 = vadd.f32 %v816_v44, %v814_v43 }
 0x2b3   : > { %v820_v45 = vpop.f32.mrf.mxu1 }
 0x2b5   : > { %v822_v30 = vpop.f32.mrf.mxu1 }
 0x2b6   : > { %v855_v52 = vadd.f32 %v822_v30, %v820_v45  ;;  %v885_v30 = vld [vmem:[%s4611_s3 + $0x10] sm:$0xff] }
 0x2b7   : > { %v826_v46 = vpop.f32.mrf.mxu1 }
 0x2b9   : > { %v828_v47 = vpop.f32.mrf.mxu1 }
 0x2ba   : > { %v858_v54 = vadd.f32 %v828_v47, %v826_v46 }
 0x2bb   : > { %v832_v48 = vpop.f32.mrf.mxu1 }
 0x2bd   : > { %v834_v49 = vpop.f32.mrf.mxu1 }
 0x2be   : > { %v861_v31 = vadd.f32 %v834_v49, %v832_v48  ;;  %v886_v48 = vld [vmem:[%s4611_s3 + $0x18] sm:$0xff] }
 0x2bf   : > { %v838_v50 = vpop.f32.mrf.mxu1 }
 0x2c0   : > { %862 = vadd.xlane.f32.xlu1 %v861_v31 }
 0x2c1   : > { %v840_v51 = vpop.f32.mrf.mxu1 }
 0x2c2   : > { %v864_v32 = vadd.f32 %v840_v51, %v838_v50  ;;  %v884_v50 = vld [vmem:[%s4611_s3 + $0x8] sm:$0xff] }
 0x2c4   : > { %856 = vadd.xlane.f32.xlu1 %v855_v52  ;;  %865 = vadd.xlane.f32.xlu0 %v864_v32  ;;  %v887_v52 = vld [vmem:[%s4611_s3 + $0x20] sm:$0xff] }
 0x2c8   : > { %850 = vadd.xlane.f32.xlu1 %v849_v53  ;;  %859 = vadd.xlane.f32.xlu0 %v858_v54 }
 0x2cc   : > { %844 = vadd.xlane.f32.xlu1 %v843_v55  ;;  %853 = vadd.xlane.f32.xlu0 %v852_v56  ;;  %v883_v56 = vld [vmem:[%s4611_s3] sm:$0xff] }
 0x2d0   : > { %847 = vadd.xlane.f32.xlu0 %v846_v0  ;;  %v888_v0 = vld [vmem:[%s4611_s3 + $0x28] sm:$0xff] }
 0x2dd   : > { %1000 = vperm.xlu1 %3061, %v906_v6  }
 0x2e1   : > { %995 = vperm.xlu1 %3061, %v905_v10  }
 0x2e5   : > { %990 = vperm.xlu1 %3061, %v904_v13  }
 0x2e9   : > { %985 = vperm.xlu1 %3061, %v903_v15   ;;  %v889_v15 = vld [vmem:[%s4611_s3 + $0x30] sm:$0xff] }
 0x349   : > { %v863_v17 = vpop.xlane.xlu1 %862 }
 0x34a   : > { %v873_v44 = vadd.f32 1e-06, %v863_v17  ;;  %v899_v17 = vld [vmem:[%s4612_s4] sm:$0xff] }
 0x34d   : > { %v857_v35 = vpop.xlane.xlu1 %856  ;;  %v866_v36 = vpop.xlane.xlu0 %865 }
 0x34e   : > { %v874_v20 = vadd.f32 1e-06, %v866_v36  ;;  %v871_v24 = vadd.f32 1e-06, %v857_v35  ;;  %v1066_v36 = vld [vmem:[%s4616_s8 + $0x78] sm:$0xff] }
 0x350   : > { %3063 = vrsqrt.f32 %v874_v20  ;;  %v902_v20 = vld [vmem:[%s4612_s4 + $0x18] sm:$0xff] }
 0x351   : > { %v851_v21 = vpop.xlane.xlu1 %850  ;;  %v860_v22 = vpop.xlane.xlu0 %859 }
 0x352   : > { %v869_v40 = vadd.f32 1e-06, %v851_v21  ;;  %v872_v29 = vadd.f32 1e-06, %v860_v22  ;;  %v1065_v21 = vld [vmem:[%s4616_s8 + $0x70] sm:$0xff] }
 0x353   : > { %v901_v22 = vld [vmem:[%s4612_s4 + $0x10] sm:$0xff] }
 0x354   : > { %3065 = vrsqrt.f32 %v869_v40  ;;  %v1064_v40 = vld [vmem:[%s4616_s8 + $0x68] sm:$0xff] }
 0x355   : > { %v854_v23 = vpop.xlane.xlu0 %853  ;;  %v845_v25 = vpop.xlane.xlu1 %844 }
 0x356   : > { %v870_v41 = vadd.f32 1e-06, %v854_v23  ;;  %v867_v27 = vadd.f32 1e-06, %v845_v25  ;;  %v900_v23 = vld [vmem:[%s4612_s4 + $0x8] sm:$0xff]  ;;  %v1061_v25 = vld [vmem:[%s4616_s8 + $0x50] sm:$0xff] }
 0x358   : > { %3067 = vrsqrt.f32 %v870_v41  ;;  %v1063_v41 = vld [vmem:[%s4616_s8 + $0x60] sm:$0xff] }
 0x359   : > { %v848_v26 = vpop.xlane.xlu0 %847  ;;  %3069 = vrsqrt.f32 %v871_v24  ;;  %v1062_v24 = vld [vmem:[%s4616_s8 + $0x58] sm:$0xff] }
 0x35a   : > { %v868_v28 = vadd.f32 1e-06, %v848_v26  ;;  %v1060_v26 = vld [vmem:[%s4616_s8 + $0x48] sm:$0xff] }
 0x35c   : > { %3071 = vrsqrt.f32 %v868_v28  ;;  %v1058_v28 = vld [vmem:[%s4616_s8 + $0x38] sm:$0xff] }
 0x35d   : > { %v3064_v43 = vpop.eup %3063  ;;  %3073 = vrsqrt.f32 %v867_v27  ;;  %v1059_v27 = vld [vmem:[%s4616_s8 + $0x40] sm:$0xff] }
 0x35e   : > { %3075 = vrsqrt.f32 %v872_v29  ;;  %v898_v45 = vmul.f32 %v3064_v43, %v890_v42  ;;  %v1057_v29 = vld [vmem:[%s4616_s8 + $0x30] sm:$0xff]  ;;  %v1056_v42 = vld [vmem:[%s4616_s8 + $0x28] sm:$0xff]  ;;  %v1055_v43 = vld [vmem:[%s4616_s8 + $0x20] sm:$0xff] }
 0x35f   : > { %3077 = vrsqrt.f32 %v873_v44  ;;  %v1054_v44 = vld [vmem:[%s4616_s8 + $0x18] sm:$0xff] }
 0x360   : > { %944 = vperm.xlu0 %3062, %v898_v45   ;;  %v1053_v45 = vld [vmem:[%s4616_s8 + $0x10] sm:$0xff] }
 0x361   : > { %v3066_v46 = vpop.eup %3065 }
 0x362   : > { %v893_v47 = vmul.f32 %v3066_v46, %v885_v30  ;;  %v1052_v30 = vld [vmem:[%s4616_s8 + $0x8] sm:$0xff]  ;;  %v1051_v46 = vld [vmem:[%s4616_s8] sm:$0xff] }
 0x364   : > { %919 = vperm.xlu0 %3062, %v893_v47   ;;  %v1082_v47 = vld [vmem:[%s4616_s8 + $0xf8] sm:$0xff] }
 0x365   : > { %v3068_v49 = vpop.eup %3067 }
 0x366   : > { %v894_v31 = vmul.f32 %v3068_v49, %v886_v48  ;;  %v3070_v51 = vpop.eup %3069  ;;  %v1080_v48 = vld [vmem:[%s4616_s8 + $0xe8] sm:$0xff]  ;;  %v1079_v49 = vld [vmem:[%s4616_s8 + $0xe0] sm:$0xff] }
 0x367   : > { %v895_v55 = vmul.f32 %v3070_v51, %v887_v52  ;;  %v1076_v51 = vld [vmem:[%s4616_s8 + $0xc8] sm:$0xff]  ;;  %v1075_v52 = vld [vmem:[%s4616_s8 + $0xc0] sm:$0xff] }
 0x368   : > { %924 = vperm.xlu1 %3061, %v894_v31   ;;  %v1078_v31 = vld [vmem:[%s4616_s8 + $0xd8] sm:$0xff] }
 0x369   : > { %v3072_v32 = vpop.eup %3071 }
 0x36a   : > { %v892_v53 = vmul.f32 %v3072_v32, %v884_v50  ;;  %v3074_v54 = vpop.eup %3073  ;;  %v1077_v50 = vld [vmem:[%s4616_s8 + $0xd0] sm:$0xff]  ;;  %v3827_v32 = vpop.permute.xlu1 %1000 }
 0x36b   : > { %v3076_v63 = vpop.eup %3075  ;;  %v891_v6 = vmul.f32 %v3074_v54, %v883_v56  ;;  %v1072_v56 = vld [vmem:[%s4616_s8 + $0xa8] sm:$0xff] }
 0x36c   : > { %914 = vperm.xlu0 %3062, %v892_v53   ;;  %929 = vperm.xlu1 %3061, %v895_v55   ;;  %v896_v10 = vmul.f32 %v3076_v63, %v888_v0  ;;  %v3078_v13 = vpop.eup %3077  ;;  %v1074_v53 = vld [vmem:[%s4616_s8 + $0xb8] sm:$0xff]  ;;  %v1073_v55 = vld [vmem:[%s4616_s8 + $0xb0] sm:$0xff] }
 0x36d   : > { %v897_v35 = vmul.f32 %v3078_v13, %v889_v15  ;;  %v1070_v13 = vld [vmem:[%s4616_s8 + $0x98] sm:$0xff] }
 0x36e   : > { %v3832_v54 = vpop.permute.xlu1 %995 }
 0x370   : > { %909 = vperm.xlu0 %3062, %v891_v6   ;;  %934 = vperm.xlu1 %3061, %v896_v10  }
 0x372   : > { %v3840_v63 = vpop.permute.xlu1 %990 }
 0x374   : > { %965 = vperm.xlu0 %3062, %v899_v17   ;;  %939 = vperm.xlu1 %3061, %v897_v35  }
 0x376   : > { %v3853_v35 = vpop.permute.xlu1 %985 }
 0x378   : > { %1160 = vperm.xlu0 %3062, %v1066_v36   ;;  %980 = vperm.xlu1 %3061, %v902_v20  }
 0x37c   : > { %1155 = vperm.xlu0 %3062, %v1065_v21   ;;  %975 = vperm.xlu1 %3061, %v901_v22   ;;  %v1596_v21 = vld [vmem:[%s3470_s16] sm:$0xff] }
 0x380   : > { %1150 = vperm.xlu0 %3062, %v1064_v40   ;;  %970 = vperm.xlu1 %3061, %v900_v23   ;;  %v1667_v40 = vld [vmem:[%s4613_s5 + $0x38] sm:$0xff]  ;;  %v1604_v23 = vsub.f32 %v1596_v21, %v3651_v18 }
 0x381   : > { %2896 = vmatprep.subr.mxu1 %v1667_v40 }
 0x382   : > { %2897 = vmatpush3.msra.mxu1 %v1667_v40 }
 0x384   : > { %1145 = vperm.xlu0 %3062, %v1063_v41  }
 0x388   : > { %1140 = vperm.xlu0 %3062, %v1062_v24   ;;  %v1666_v24 = vld [vmem:[%s4613_s5 + $0x30] sm:$0xff] }
 0x389   : > { %2898 = vmatprep.subr.mxu1 %v1666_v24 }
 0x38a   : > { %2899 = vmatpush3.msra.mxu1 %v1666_v24 }
 0x38c   : > { %1135 = vperm.xlu0 %3062, %v1061_v25  }
 0x390   : > { %1130 = vperm.xlu0 %3062, %v1060_v26  }
 0x394   : > { %1125 = vperm.xlu0 %3062, %v1059_v27   ;;  %v1665_v27 = vld [vmem:[%s4613_s5 + $0x28] sm:$0xff] }
 0x395   : > { %2900 = vmatprep.subr.mxu1 %v1665_v27 }
 0x396   : > { %2901 = vmatpush3.msra.mxu1 %v1665_v27  ;;  %v1599_v27 = vld [vmem:[%s3470_s16 + $0x18] sm:$0xff] }
 0x398   : > { %1120 = vperm.xlu0 %3062, %v1058_v28  }
 0x39c   : > { %1115 = vperm.xlu0 %3062, %v1057_v29   ;;  %v1664_v29 = vld [vmem:[%s4613_s5 + $0x20] sm:$0xff] }
 0x39d   : > { %2902 = vmatprep.subr.mxu1 %v1664_v29 }
 0x39e   : > { %2903 = vmatpush3.msra.mxu1 %v1664_v29  ;;  %v1600_v29 = vld [vmem:[%s3470_s16 + $0x20] sm:$0xff] }
 0x3a0   : > { %1110 = vperm.xlu0 %3062, %v1056_v42  }
 0x3a4   : > { %1105 = vperm.xlu0 %3062, %v1055_v43  }
 0x3a8   : > { %1100 = vperm.xlu0 %3062, %v1054_v44  }
 0x3ac   : > { %1095 = vperm.xlu0 %3062, %v1053_v45  }
 0x3b0   : > { %1090 = vperm.xlu0 %3062, %v1052_v30  }
 0x3b4   : > { %1085 = vperm.xlu0 %3062, %v1051_v46  }
 0x3b8   : > { %1240 = vperm.xlu0 %3062, %v1082_v47  }
 0x3bc   : > { %1230 = vperm.xlu0 %3062, %v1080_v48   ;;  %v1597_v48 = vld [vmem:[%s3470_s16 + $0x8] sm:$0xff] }
 0x3c0   : > { %1225 = vperm.xlu0 %3062, %v1079_v49  }
 0x3c4   : > { %1220 = vperm.xlu0 %3062, %v1078_v31  }
 0x3c8   : > { %1215 = vperm.xlu0 %3062, %v1077_v50   ;;  %v1661_v50 = vld [vmem:[%s4613_s5 + $0x8] sm:$0xff] }
 0x3cc   : > { %1210 = vperm.xlu0 %3062, %v1076_v51  }
 0x3d0   : > { %1205 = vperm.xlu0 %3062, %v1075_v52  }
 0x3d4   : > { %1200 = vperm.xlu0 %3062, %v1074_v53  }
 0x3d8   : > { %1195 = vperm.xlu0 %3062, %v1073_v55   ;;  %v1598_v55 = vld [vmem:[%s3470_s16 + $0x10] sm:$0xff] }
 0x3d9   : > { %v1606_v21 = vsub.f32 %v1598_v55, %v3611_v5  ;;  %v1039_v55 = vld [vmem:[%s4615_s7 + $0xa0] sm:$0xff] }
 0x3db   : > { %v3842_v0 = vpop.permute.xlu0 %944 }
 0x3dc   : > { %1190 = vperm.xlu0 %3062, %v1072_v56   ;;  %v961_v6 = vmul.f32 %v3842_v0, %v3587_v61  ;;  %v962_v10 = vmul.f32 %v3842_v0, %v3583_v60  ;;  %v1605_v56 = vsub.f32 %v1597_v48, %v3643_v33  ;;  %v1030_v48 = vld [vmem:[%s4615_s7 + $0x58] sm:$0xff] }
 0x3de   : > { %v1018_v15 = vadd.f32 %v3827_v32, %v962_v10  ;;  %v1017_v17 = vadd.f32 %v3827_v32, %v961_v6 }
 0x3df   : > { %v3855_v36 = vpop.permute.xlu0 %919 }
 0x3e0   : > { %1180 = vperm.xlu0 %3062, %v1070_v13   ;;  %1355 = vmatprep.subr.mxu0 %v1018_v15  ;;  %v952_v10 = vmul.f32 %v3855_v36, %v3641_v16  ;;  %v951_v13 = vmul.f32 %v3855_v36, %v3649_v34 }
 0x3e1   : > { %1356 = vmatpush1.msra.mxu0 %v1017_v17 }
 0x3e3   : > { %v3857_v20 = vpop.permute.xlu1 %924 }
 0x3e4   : > { %v953_v51 = vmul.f32 %v3857_v20, %v3635_v14 }
 0x3e7   : > { %v3859_v61 = vpop.permute.xlu0 %914  ;;  %v3861_v60 = vpop.permute.xlu1 %929 }
 0x3e8   : > { %v956_v30 = vmul.f32 %v3861_v60, %v3617_v7  ;;  %v949_v15 = vmul.f32 %v3859_v61, %v3663_v37  ;;  %v950_v33 = vmul.f32 %v3859_v61, %v3657_v19  ;;  %v1613_v16 = vmul.f32 %v1605_v56, %v3859_v61  ;;  %v1081_v56 = vld [vmem:[%s4616_s8 + $0xf0] sm:$0xff] }
 0x3e9   : > { %v1614_v61 = vmul.f32 %v1606_v21, %v3855_v36  ;;  %v1046_v21 = vld [vmem:[%s4615_s7 + $0xd8] sm:$0xff] }
 0x3ea   : > { %v1012_v31 = vadd.f32 %v3853_v35, %v956_v30  ;;  %v1021_v30 = vld [vmem:[%s4615_s7 + $0x10] sm:$0xff] }
 0x3eb   : > { %v3864_v22 = vpop.permute.xlu0 %909  ;;  %v3870_v41 = vpop.permute.xlu1 %934 }
 0x3ec   : > { %v1612_v25 = vmul.f32 %v1604_v23, %v3864_v22  ;;  %v958_v42 = vmul.f32 %v3870_v41, %v3601_v2  ;;  %v957_v45 = vmul.f32 %v3870_v41, %v3609_v4  ;;  %v1662_v4 = vld [vmem:[%s4613_s5 + $0x10] sm:$0xff]  ;;  %v948_v34 = vmul.f32 %v3864_v22, %v3669_v38 }
 0x3ed   : > { %v947_v19 = vmul.f32 %v3864_v22, %v3675_v39  ;;  %v1608_v22 = vsub.f32 %v1600_v29, %v3579_v59  ;;  %v1602_v59 = vld [vmem:[%s3470_s16 + $0x30] sm:$0xff] }
 0x3ee   : > { %v1014_v7 = vadd.f32 %v3840_v63, %v958_v42  ;;  %v1013_v49 = vadd.f32 %v3840_v63, %v957_v45  ;;  %v1019_v42 = vld [vmem:[%s4615_s7] sm:$0xff] }
 0x3ef   : > { %v3876_v26 = vpop.permute.xlu0 %965  ;;  %v3881_v28 = vpop.permute.xlu1 %939 }
 0x3f0   : > { %v3884_v18 = vadd.f32 %v1612_v25, %v3876_v26  ;;  %v959_v43 = vmul.f32 %v3881_v28, %v3597_v1  ;;  %v960_v44 = vmul.f32 %v3881_v28, %v3605_v3  ;;  %v1663_v1 = vld [vmem:[%s4613_s5 + $0x18] sm:$0xff]  ;;  %v955_v3 = vmul.f32 %v3861_v60, %v3625_v11 }
 0x3f1   : > { %2904 = vmatprep.subr.mxu1 %v1663_v1  ;;  %v954_v11 = vmul.f32 %v3857_v20, %v3629_v12  ;;  %v1660_v12 = vld [vmem:[%s4613_s5] sm:$0xff]  ;;  %v1004_v5 = vadd.f32 %v3876_v26, %v948_v34  ;;  %v1003_v38 = vadd.f32 %v3876_v26, %v947_v19  ;;  %v1601_v26 = vld [vmem:[%s3470_s16 + $0x28] sm:$0xff] }
 0x3f2   : > { %1628 = vxpose.xlu1.b32.start [1/8] (short) %v3884_v18, 128  ;;  %v1015_v46 = vadd.f32 %v3832_v54, %v959_v43  ;;  %v1016_v2 = vadd.f32 %v3832_v54, %v960_v44  ;;  %2905 = vmatpush3.msra.mxu1 %v1663_v1  ;;  %v1011_v52 = vadd.f32 %v3853_v35, %v955_v3  ;;  %v1022_v1 = vld [vmem:[%s4615_s7 + $0x18] sm:$0xff] }
 0x3f3   : > { %v3907_v47 = vpop.permute.xlu1 %980  ;;  %2906 = vmatprep.subr.mxu1 %v1662_v4  ;;  %v1607_v43 = vsub.f32 %v1599_v27, %v3619_v9  ;;  %v1020_v9 = vld [vmem:[%s4615_s7 + $0x8] sm:$0xff]  ;;  %v1616_v44 = vmul.f32 %v1608_v22, %v3861_v60  ;;  %v1050_v27 = vld [vmem:[%s4615_s7 + $0xf8] sm:$0xff] }
 0x3f4   : > { %1357 = vmatprep.subr.mxu0 %v1016_v2  ;;  %2907 = vmatpush3.msra.mxu1 %v1662_v4  ;;  %v1010_v6 = vadd.f32 %v3907_v47, %v954_v11  ;;  %v1009_v14 = vadd.f32 %v3907_v47, %v953_v51  ;;  %v1610_v2 = vsub.f32 %v1602_v59, %v3589_v62  ;;  %v1023_v62 = vld [vmem:[%s4615_s7 + $0x20] sm:$0xff]  ;;  %v1032_v11 = vld [vmem:[%s4615_s7 + $0x68] sm:$0xff] }
 0x3f5   : > { %1358 = vmatpush1.msra.mxu0 %v1015_v46  ;;  %2908 = vmatprep.subr.mxu1 %v1661_v50  ;;  %v1615_v36 = vmul.f32 %v1607_v43, %v3857_v20  ;;  %v1609_v20 = vsub.f32 %v1601_v26, %v3575_v57  ;;  %v3981_v46 = vadd.f32 %v1616_v44, %v3853_v35  ;;  %v1603_v57 = vld [vmem:[%s3470_s16 + $0x38] sm:$0xff]  ;;  %v1035_v51 = vld [vmem:[%s4615_s7 + $0x80] sm:$0xff] }
 0x3f6   : > { %1359 = vmatprep.subr.mxu0 %v1014_v7  ;;  %2909 = vmatpush3.msra.mxu1 %v1661_v50  ;;  %v1618_v35 = vmul.f32 %v1610_v2, %v3881_v28  ;;  %v1028_v28 = vld [vmem:[%s4615_s7 + $0x48] sm:$0xff]  ;;  %v1029_v7 = vld [vmem:[%s4615_s7 + $0x50] sm:$0xff]  ;;  %v1034_v50 = vld [vmem:[%s4615_s7 + $0x78] sm:$0xff] }
 0x3f7   : > { %v976_v53 = vpop.permute.xlu1 %975  ;;  %1360 = vmatpush1.msra.mxu0 %v1013_v49  ;;  %2910 = vmatprep.subr.mxu1 %v1660_v12  ;;  %v3970_v45 = vadd.f32 %v1615_v36, %v3907_v47  ;;  %v1617_v60 = vmul.f32 %v1609_v20, %v3870_v41  ;;  %v1611_v41 = vsub.f32 %v1603_v57, %v3577_v58  ;;  %v1024_v58 = vld [vmem:[%s4615_s7 + $0x28] sm:$0xff]  ;;  %v1031_v49 = vld [vmem:[%s4615_s7 + $0x60] sm:$0xff] }
 0x3f8   : > { %1361 = vmatprep.subr.mxu0 %v1012_v31  ;;  %v1008_v17 = vadd.f32 %v976_v53, %v952_v10  ;;  %2911 = vmatpush3.msra.mxu1 %v1660_v12  ;;  %v1007_v40 = vadd.f32 %v976_v53, %v951_v13  ;;  %v3957_v39 = vadd.f32 %v1614_v61, %v976_v53  ;;  %v1033_v31 = vld [vmem:[%s4615_s7 + $0x70] sm:$0xff]  ;;  %v1038_v12 = vld [vmem:[%s4615_s7 + $0x98] sm:$0xff]  ;;  %v1071_v10 = vld [vmem:[%s4616_s8 + $0xa0] sm:$0xff] }
 0x3f9   : > { %1362 = vmatpush1.msra.mxu0 %v1011_v52  ;;  %v3993_v3 = vadd.f32 %v1617_v60, %v3840_v63  ;;  %v1619_v47 = vmul.f32 %v1611_v41, %v3842_v0  ;;  %v4005_v4 = vadd.f32 %v1618_v35, %v3832_v54  ;;  %v1025_v54 = vld [vmem:[%s4615_s7 + $0x30] sm:$0xff]  ;;  %v1026_v0 = vld [vmem:[%s4615_s7 + $0x38] sm:$0xff]  ;;  %v1036_v52 = vld [vmem:[%s4615_s7 + $0x88] sm:$0xff]  ;;  %v1161_v60 = vpop.permute.xlu0 %1160 }
 0x3fa   : > { %1363 = vmatprep.subr.mxu0 %v1010_v6  ;;  %v1037_v53 = vld [vmem:[%s4615_s7 + $0x90] sm:$0xff]  ;;  %v1040_v6 = vld [vmem:[%s4615_s7 + $0xa8] sm:$0xff] }
 0x3fb   : > { %v971_v23 = vpop.permute.xlu1 %970  ;;  %1364 = vmatpush1.msra.mxu0 %v1009_v14  ;;  %v4014_v63 = vadd.f32 %v1619_v47, %v3827_v32  ;;  %v1027_v32 = vld [vmem:[%s4615_s7 + $0x40] sm:$0xff]  ;;  %v1041_v14 = vld [vmem:[%s4615_s7 + $0xb0] sm:$0xff] }
 0x3fc   : > { %v1005_v37 = vadd.f32 %v971_v23, %v949_v15  ;;  %v1006_v24 = vadd.f32 %v971_v23, %v950_v33  ;;  %v3943_v25 = vadd.f32 %v1613_v16, %v971_v23  ;;  %1365 = vmatprep.subr.mxu0 %v1008_v17  ;;  %v1069_v13 = vld [vmem:[%s4616_s8 + $0x90] sm:$0xff]  ;;  %v1042_v15 = vld [vmem:[%s4615_s7 + $0xb8] sm:$0xff]  ;;  %v1043_v17 = vld [vmem:[%s4615_s7 + $0xc0] sm:$0xff] }
 0x3fd   : > { %1366 = vmatpush1.msra.mxu0 %v1007_v40  ;;  %v1044_v33 = vld [vmem:[%s4615_s7 + $0xc8] sm:$0xff]  ;;  %v1045_v16 = vld [vmem:[%s4615_s7 + $0xd0] sm:$0xff]  ;;  %v1047_v40 = vld [vmem:[%s4615_s7 + $0xe0] sm:$0xff]  ;;  %v1156_v35 = vpop.permute.xlu0 %1155 }
 0x3fe   : > { %1367 = vmatprep.subr.mxu0 %v1006_v24  ;;  %1629 = vxpose.xlu1.b32.cont [2/8] (short) %v3943_v25, 128  ;;  %v1048_v23 = vld [vmem:[%s4615_s7 + $0xe8] sm:$0xff] }
 0x3ff   : > { %1368 = vmatpush1.msra.mxu0 %v1005_v37  ;;  %v1049_v37 = vld [vmem:[%s4615_s7 + $0xf0] sm:$0xff] }
 0x400   : > { %1369 = vmatprep.subr.mxu0 %v1004_v5 }
 0x401   : > { %1370 = vmatpush1.msra.mxu0 %v1003_v38 }
 0x402   : > { %2793 = vmatmul.mubr.msk.f32.vlgmr.msra.gmra.mxu0 %vm536_vm0, %v1019_v42  ;;  %1630 = vxpose.xlu1.b32.cont [3/8] (short) %v3957_v39, 128 }
 0x403   : > { %1409 = vmatprep.mubr.f32.mxu0 %v3295_v8 }
 0x406   : > { %2794 = vmatmul.mubr.msk.f32.gmra.mxu0 %vm536_vm0, %v1020_v9  ;;  %1631 = vxpose.xlu1.b32.cont [4/8] (short) %v3970_v45, 128 }
 0x407   : > { %1415 = vmatprep.mubr.f32.mxu0 %v3295_v8 }
 0x40a   : > { %2795 = vmatmul.mubr.msk.f32.gmra.mxu0 %vm536_vm0, %v1021_v30  ;;  %1632 = vxpose.xlu1.b32.cont [5/8] (short) %v3981_v46, 128 }
 0x40b   : > { %1421 = vmatprep.mubr.f32.mxu0 %v3295_v8 }
 0x40e   : > { %2796 = vmatmul.mubr.msk.f32.gmra.mxu0 %vm536_vm0, %v1022_v1  ;;  %1633 = vxpose.xlu1.b32.cont [6/8] (short) %v3993_v3, 128 }
 0x40f   : > { %1427 = vmatprep.mubr.f32.mxu0 %v3295_v8 }
 0x412   : > { %2797 = vmatmul.mubr.msk.f32.gmra.mxu0 %vm536_vm0, %v1023_v62  ;;  %1634 = vxpose.xlu1.b32.cont [7/8] (short) %v4005_v4, 128 }
 0x413   : > { %1433 = vmatprep.mubr.f32.mxu0 %v3295_v8 }
 0x416   : > { %2798 = vmatmul.mubr.msk.f32.gmra.mxu0 %vm536_vm0, %v1024_v58  ;;  %1635 = vxpose.xlu1.b32.end [8/8] (short) %v4014_v63, 128  ;;  %v1151_v58 = vpop.permute.xlu0 %1150 }
 0x417   : > { %1439 = vmatprep.mubr.f32.mxu0 %v3295_v8 }
 0x41a   : > { %2799 = vmatmul.mubr.msk.f32.gmra.mxu0 %vm536_vm0, %v1025_v54 }
 0x41b   : > { %1445 = vmatprep.mubr.f32.mxu0 %v3295_v8 }
 0x41e   : > { %2800 = vmatmul.mubr.msk.f32.gmra.mxu0 %vm536_vm0, %v1026_v0 }
 0x41f   : > { %1451 = vmatprep.mubr.f32.mxu0 %v3295_v8 }
 0x422   : > { %2801 = vmatmul.mubr.msk.f32.gmra.mxu0 %vm536_vm0, %v1027_v32 }
 0x423   : > { %1457 = vmatprep.mubr.f32.mxu0 %v3295_v8 }
 0x426   : > { %2802 = vmatmul.mubr.msk.f32.gmra.mxu0 %vm536_vm0, %v1028_v28  ;;  %v1146_v28 = vpop.permute.xlu0 %1145 }
 0x427   : > { %1463 = vmatprep.mubr.f32.mxu0 %v3295_v8 }
 0x42a   : > { %2803 = vmatmul.mubr.msk.f32.gmra.mxu0 %vm536_vm0, %v1029_v7 }
 0x42b   : > { %1469 = vmatprep.mubr.f32.mxu0 %v3295_v8 }
 0x42e   : > { %2804 = vmatmul.mubr.msk.f32.gmra.mxu0 %vm536_vm0, %v1030_v48 }
 0x42f   : > { %1475 = vmatprep.mubr.f32.mxu0 %v3295_v8 }
 0x432   : > { %2805 = vmatmul.mubr.msk.f32.gmra.mxu0 %vm536_vm0, %v1031_v49 }
 0x433   : > { %1481 = vmatprep.mubr.f32.mxu0 %v3295_v8 }
 0x436   : > { %2806 = vmatmul.mubr.msk.f32.gmra.mxu0 %vm536_vm0, %v1032_v11  ;;  %v1141_v11 = vpop.permute.xlu0 %1140 }
 0x437   : > { %1487 = vmatprep.mubr.f32.mxu0 %v3295_v8 }
 0x43a   : > { %2807 = vmatmul.mubr.msk.f32.gmra.mxu0 %vm536_vm0, %v1033_v31 }
 0x43b   : > { %1493 = vmatprep.mubr.f32.mxu0 %v3295_v8 }
 0x43e   : > { %2808 = vmatmul.mubr.msk.f32.gmra.mxu0 %vm536_vm0, %v1034_v50 }
 0x43f   : > { %1499 = vmatprep.mubr.f32.mxu0 %v3295_v8 }
 0x442   : > { %2809 = vmatmul.mubr.msk.f32.gmra.mxu0 %vm536_vm0, %v1035_v51 }
 0x443   : > { %1505 = vmatprep.mubr.f32.mxu0 %v3295_v8 }
 0x446   : > { %2810 = vmatmul.mubr.msk.f32.gmra.mxu0 %vm536_vm0, %v1036_v52  ;;  %v1136_v52 = vpop.permute.xlu0 %1135 }
 0x447   : > { %1511 = vmatprep.mubr.f32.mxu0 %v3295_v8 }
 0x44a   : > { %2811 = vmatmul.mubr.msk.f32.gmra.mxu0 %vm536_vm0, %v1037_v53 }
 0x44b   : > { %1517 = vmatprep.mubr.f32.mxu0 %v3295_v8 }
 0x44e   : > { %2812 = vmatmul.mubr.msk.f32.gmra.mxu0 %vm536_vm0, %v1038_v12 }
 0x44f   : > { %1523 = vmatprep.mubr.f32.mxu0 %v3295_v8 }
 0x452   : > { %2813 = vmatmul.mubr.msk.f32.gmra.mxu0 %vm536_vm0, %v1039_v55 }
 0x453   : > { %1529 = vmatprep.mubr.f32.mxu0 %v3295_v8 }
 0x454   : > { %1235 = vperm.xlu1 %3061, %v1081_v56   ;;  %v1131_v56 = vpop.permute.xlu0 %1130 }
 0x456   : > { %2814 = vmatmul.mubr.msk.f32.gmra.mxu0 %vm536_vm0, %v1040_v6 }
 0x457   : > { %1535 = vmatprep.mubr.f32.mxu0 %v3295_v8 }
 0x458   : > { %1185 = vperm.xlu1 %3061, %v1071_v10  }
 0x45a   : > { %2815 = vmatmul.mubr.msk.f32.gmra.mxu0 %vm536_vm0, %v1041_v14 }
 0x45b   : > { %1541 = vmatprep.mubr.f32.mxu0 %v3295_v8 }
 0x45c   : > { %1175 = vperm.xlu1 %3061, %v1069_v13   ;;  %v1126_v13 = vpop.permute.xlu0 %1125 }
 0x45e   : > { %2816 = vmatmul.mubr.msk.f32.gmra.mxu0 %vm536_vm0, %v1042_v15 }
 0x45f   : > { %1547 = vmatprep.mubr.f32.mxu0 %v3295_v8 }
 0x462   : > { %2817 = vmatmul.mubr.msk.f32.gmra.mxu0 %vm536_vm0, %v1043_v17 }
 0x463   : > { %1553 = vmatprep.mubr.f32.mxu0 %v3295_v8 }
 0x466   : > { %2818 = vmatmul.mubr.msk.f32.gmra.mxu0 %vm536_vm0, %v1044_v33 }
 0x467   : > { %1559 = vmatprep.mubr.f32.mxu0 %v3295_v8 }
 0x46a   : > { %2819 = vmatmul.mubr.msk.f32.gmra.mxu0 %vm536_vm0, %v1045_v16  ;;  %v1121_v16 = vpop.permute.xlu0 %1120 }
 0x46b   : > { %1565 = vmatprep.mubr.f32.mxu0 %v3295_v8 }
 0x46e   : > { %2820 = vmatmul.mubr.msk.f32.gmra.mxu0 %vm536_vm0, %v1046_v21 }
 0x46f   : > { %1571 = vmatprep.mubr.f32.mxu0 %v3295_v8 }
 0x472   : > { %2821 = vmatmul.mubr.msk.f32.gmra.mxu0 %vm536_vm0, %v1047_v40 }
 0x473   : > { %1577 = vmatprep.mubr.f32.mxu0 %v3295_v8 }
 0x476   : > { %2822 = vmatmul.mubr.msk.f32.gmra.mxu0 %vm536_vm0, %v1048_v23  ;;  %v1644_v34 = vpop.trf.xlu1 }
 0x477   : > { %2912 = vmatprep.mubr.msk.f32.mxu1 %vm536_vm0, %v1644_v34  ;;  %1583 = vmatprep.mubr.f32.mxu0 %v3295_v8  ;;  %v1116_v34 = vpop.permute.xlu0 %1115 }
 0x47a   : > { %2823 = vmatmul.mubr.msk.f32.gmra.mxu0 %vm536_vm0, %v1049_v37  ;;  %v1645_v24 = vpop.trf.xlu1 }
 0x47b   : > { %2913 = vmatmul.mubr.msk.f32.vlgmr.msra.gmra.mxu1 %vm536_vm0, %v1645_v24  ;;  %1589 = vmatprep.mubr.f32.mxu0 %v3295_v8 }
 0x47e   : > { %2824 = vmatmul.mubr.msk.f32.gmra.mxu0 %vm536_vm0, %v1050_v27  ;;  %v1646_v19 = vpop.trf.xlu1 }
 0x47f   : > { %2915 = vmatprep.mubr.msk.f32.mxu1 %vm536_vm0, %v1646_v19  ;;  %v1111_v19 = vpop.permute.xlu0 %1110 }
 0x482   : > { %v1647_v61 = vpop.trf.xlu1 }
 0x483   : > { %2916 = vmatmul.mubr.msk.f32.gmra.mxu1 %vm536_vm0, %v1647_v61 }
 0x486   : > { %v1648_v5 = vpop.trf.xlu1 }
 0x487   : > { %2918 = vmatprep.mubr.msk.f32.mxu1 %vm536_vm0, %v1648_v5 }
 0x48a   : > { %v1649_v29 = vpop.trf.xlu1 }
 0x48b   : > { %2919 = vmatmul.mubr.msk.f32.gmra.mxu1 %vm536_vm0, %v1649_v29 }
 0x48e   : > { %v1650_v38 = vpop.trf.xlu1 }
 0x48f   : > { %2921 = vmatprep.mubr.msk.f32.mxu1 %vm536_vm0, %v1650_v38 }
 0x492   : > { %v1651_v42 = vpop.trf.xlu1 }
 0x493   : > { %2922 = vmatmul.mubr.msk.f32.gmra.mxu1 %vm536_vm0, %v1651_v42 }
 0x496   : > { %v1652_v43 = vpop.trf.xlu1 }
 0x497   : > { %2924 = vmatprep.mubr.msk.f32.mxu1 %vm536_vm0, %v1652_v43 }
 0x49a   : > { %v1653_v36 = vpop.trf.xlu1 }
 0x49b   : > { %2925 = vmatmul.mubr.msk.f32.gmra.mxu1 %vm536_vm0, %v1653_v36 }
 0x49e   : > { %v1654_v22 = vpop.trf.xlu1 }
 0x49f   : > { %2927 = vmatprep.mubr.msk.f32.mxu1 %vm536_vm0, %v1654_v22 }
 0x4a2   : > { %v1655_v26 = vpop.trf.xlu1 }
 0x4a3   : > { %2928 = vmatmul.mubr.msk.f32.gmra.mxu1 %vm536_vm0, %v1655_v26  ;;  %v1106_v26 = vpop.permute.xlu0 %1105 }
 0x4a6   : > { %v1656_v9 = vpop.trf.xlu1 }
 0x4a7   : > { %2930 = vmatprep.mubr.msk.f32.mxu1 %vm536_vm0, %v1656_v9 }
 0x4aa   : > { %v1657_v44 = vpop.trf.xlu1 }
 0x4ab   : > { %2931 = vmatmul.mubr.msk.f32.gmra.mxu1 %vm536_vm0, %v1657_v44 }
 0x4ae   : > { %v1658_v20 = vpop.trf.xlu1 }
 0x4af   : > { %2933 = vmatprep.mubr.msk.f32.mxu1 %vm536_vm0, %v1658_v20 }
 0x4b2   : > { %v1659_v59 = vpop.trf.xlu1 }
 0x4b3   : > { %2934 = vmatmul.mubr.msk.f32.gmra.mxu1 %vm536_vm0, %v1659_v59 }
 0x4b4   : > { %1932 = vmatprep.mubr.f32.mxu1 %v3295_v8 }
 0x4c2   : > { %v4174_v30 = vpop.f32.mrf.mxu0 }
 0x4c4   : > { %v4176_v2 = vpop.f32.mrf.mxu0 }
 0x4c6   : > { %v4178_v57 = vpop.f32.mrf.mxu0 }
 0x4c8   : > { %v4180_v1 = vpop.f32.mrf.mxu0 }
 0x4ca   : > { %v4182_v41 = vpop.f32.mrf.mxu0 }
 0x4cc   : > { %v4184_v62 = vpop.f32.mrf.mxu0 }
 0x4ce   : > { %v4186_v47 = vpop.f32.mrf.mxu0 }
 0x4d0   : > { %v4188_v54 = vpop.f32.mrf.mxu0 }
 0x4d2   : > { %v4190_v0 = vpop.f32.mrf.mxu0 }
 0x4d4   : > { %v4192_v32 = vpop.f32.mrf.mxu0 }
 0x4d6   : > { %v4194_v7 = vpop.f32.mrf.mxu0 }
 0x4d8   : > { %v4196_v48 = vpop.f32.mrf.mxu0 }
 0x4da   : > { %v4198_v49 = vpop.f32.mrf.mxu0 }
 0x4dc   : > { %v4200_v31 = vpop.f32.mrf.mxu0 }
 0x4de   : > { %v4202_v50 = vpop.f32.mrf.mxu0 }
 0x4e0   : > { %v4204_v51 = vpop.f32.mrf.mxu0 }
 0x4e2   : > { %v1453_v53 = vpop.f32.mrf.mxu0 }
 0x4e4   : > { %v1455_v12 = vpop.f32.mrf.mxu0 }
 0x4e6   : > { %v1459_v55 = vpop.f32.mrf.mxu0 }
 0x4e8   : > { %v1461_v6 = vpop.f32.mrf.mxu0 }
 0x4ea   : > { %v1465_v10 = vpop.f32.mrf.mxu0 }
 0x4ec   : > { %v1467_v14 = vpop.f32.mrf.mxu0 }
 0x4ee   : > { %v1471_v15 = vpop.f32.mrf.mxu0 }
 0x4f0   : > { %v1473_v17 = vpop.f32.mrf.mxu0 }
 0x4f2   : > { %v1477_v33 = vpop.f32.mrf.mxu0 }
 0x4f3   : > { %v1478_v59 = vadd.f32 %v1477_v33, %v1146_v28  ;;  %v1456_v33 = vadd.f32 %v1455_v12, %v1126_v13 }
 0x4f4   : > { %v1479_v21 = vpop.f32.mrf.mxu0 }
 0x4f5   : > { %v1480_v20 = vadd.f32 %v1479_v21, %v1146_v28  ;;  %v1460_v21 = vadd.f32 %v1459_v55, %v1131_v56  ;;  %v1444_v55 = vadd.f32 %v4200_v31, %v1116_v34  ;;  %v1430_v31 = vadd.f32 %v4190_v0, %v1106_v26 }
 0x4f6   : > { %v1483_v40 = vpop.f32.mrf.mxu0 }
 0x4f7   : > { %v1484_v9 = vadd.f32 %v1483_v40, %v1151_v58  ;;  %v1462_v40 = vadd.f32 %v1461_v6, %v1131_v56  ;;  %v1442_v56 = vadd.f32 %v4198_v49, %v1116_v34 }
 0x4f8   : > { %v1485_v23 = vpop.f32.mrf.mxu0 }
 0x4f9   : > { %v1486_v22 = vadd.f32 %v1485_v23, %v1151_v58  ;;  %v1101_v23 = vpop.permute.xlu0 %1100 }
 0x4fa   : > { %v1489_v37 = vpop.f32.mrf.mxu0  ;;  %v1426_v49 = vadd.f32 %v4188_v54, %v1101_v23 }
 0x4fb   : > { %v1490_v43 = vadd.f32 %v1489_v37, %v1156_v35  ;;  %v1468_v37 = vadd.f32 %v1467_v14, %v1136_v52  ;;  %v1450_v14 = vadd.f32 %v4204_v51, %v1121_v16  ;;  %v1436_v51 = vadd.f32 %v4194_v7, %v1111_v19 }
 0x4fc   : > { %v1491_v24 = vpop.f32.mrf.mxu0 }
 0x4fd   : > { %v1492_v42 = vadd.f32 %v1491_v24, %v1156_v35  ;;  %v1472_v24 = vadd.f32 %v1471_v15, %v1141_v11  ;;  %v1096_v15 = vpop.permute.xlu0 %1095 }
 0x4fe   : > { %v1495_v27 = vpop.f32.mrf.mxu0  ;;  %v1420_v7 = vadd.f32 %v4184_v62, %v1096_v15 }
 0x4ff   : > { %v1496_v29 = vadd.f32 %v1495_v27, %v1161_v60  ;;  %v1466_v27 = vadd.f32 %v1465_v10, %v1136_v52  ;;  %v1448_v52 = vadd.f32 %v4202_v50, %v1121_v16  ;;  %v1432_v50 = vadd.f32 %v4192_v32, %v1106_v26 }
 0x500   : > { %v1497_v61 = vpop.f32.mrf.mxu0  ;;  %v1418_v32 = vadd.f32 %v4182_v41, %v1096_v15 }
 0x501   : > { %v1498_v5 = vadd.f32 %v1497_v61, %v1161_v60  ;;  %v1474_v60 = vadd.f32 %v1473_v17, %v1141_v11  ;;  %v1454_v17 = vadd.f32 %v1453_v53, %v1126_v13  ;;  %v1438_v53 = vadd.f32 %v4196_v48, %v1111_v19  ;;  %v1091_v13 = vpop.permute.xlu0 %1090 }
 0x502   : > { %v4206_v38 = vpop.f32.mrf.mxu0  ;;  %v1424_v48 = vadd.f32 %v4186_v47, %v1101_v23  ;;  %v1414_v0 = vadd.f32 %v4180_v1, %v1091_v13  ;;  %v1412_v54 = vadd.f32 %v4178_v57, %v1091_v13 }
 0x503   : > { %1868 = vmatprep.subr.mxu1 %v1498_v5 }
 0x504   : > { %v4208_v36 = vpop.f32.mrf.mxu0  ;;  %1869 = vmatpush1.msra.mxu1 %v1496_v29 }
 0x505   : > { %1870 = vmatprep.subr.mxu1 %v1492_v42  ;;  %v1086_v5 = vpop.permute.xlu0 %1085 }
 0x506   : > { %v4210_v44 = vpop.f32.mrf.mxu0  ;;  %1871 = vmatpush1.msra.mxu1 %v1490_v43  ;;  %v1408_v47 = vadd.f32 %v4176_v2, %v1086_v5  ;;  %v1406_v62 = vadd.f32 %v4174_v30, %v1086_v5 }
 0x507   : > { %1872 = vmatprep.subr.mxu1 %v1486_v22 }
 0x508   : > { %v4212_v61 = vpop.f32.mrf.mxu0  ;;  %1873 = vmatpush1.msra.mxu1 %v1484_v9 }
 0x509   : > { %1874 = vmatprep.subr.mxu1 %v1480_v20  ;;  %v1241_v9 = vpop.permute.xlu0 %1240 }
 0x50a   : > { %v4214_v35 = vpop.f32.mrf.mxu0  ;;  %1875 = vmatpush1.msra.mxu1 %v1478_v59 }
 0x50b   : > { %1876 = vmatprep.subr.mxu1 %v1474_v60 }
 0x50c   : > { %v4216_v58 = vpop.f32.mrf.mxu0  ;;  %1877 = vmatpush1.msra.mxu1 %v1472_v24 }
 0x50d   : > { %1878 = vmatprep.subr.mxu1 %v1468_v37  ;;  %v1231_v60 = vpop.permute.xlu0 %1230 }
 0x50e   : > { %v4218_v28 = vpop.f32.mrf.mxu0  ;;  %1879 = vmatpush1.msra.mxu1 %v1466_v27 }
 0x50f   : > { %1880 = vmatprep.subr.mxu1 %v1462_v40 }
 0x510   : > { %v4220_v11 = vpop.f32.mrf.mxu0  ;;  %1881 = vmatpush1.msra.mxu1 %v1460_v21 }
 0x511   : > { %1882 = vmatprep.subr.mxu1 %v1456_v33  ;;  %v1226_v40 = vpop.permute.xlu0 %1225  ;;  %v4267_v33 = vld [vmem:[%s4614_s6] ss:$0 sm:$0xff] }
 0x512   : > { %v4224_v10 = vpop.f32.mrf.mxu0  ;;  %1883 = vmatpush1.msra.mxu1 %v1454_v17 }
 0x513   : > { %1884 = vmatprep.subr.mxu1 %v1450_v14 }
 0x514   : > { %v4228_v12 = vpop.f32.mrf.mxu0  ;;  %1885 = vmatpush1.msra.mxu1 %v1448_v52 }
 0x515   : > { %1886 = vmatprep.subr.mxu1 %v1444_v55 }
 0x516   : > { %v4232_v6 = vpop.f32.mrf.mxu0  ;;  %1887 = vmatpush1.msra.mxu1 %v1442_v56  ;;  %v1221_v56 = vpop.permute.xlu0 %1220 }
 0x517   : > { %1888 = vmatprep.subr.mxu1 %v1438_v53 }
 0x518   : > { %v4236_v16 = vpop.f32.mrf.mxu0  ;;  %1889 = vmatpush1.msra.mxu1 %v1436_v51  ;;  %v1236_v51 = vpop.permute.xlu1 %1235 }
 0x519   : > { %1890 = vmatprep.subr.mxu1 %v1432_v50 }
 0x51a   : > { %v4240_v34 = vpop.f32.mrf.mxu0  ;;  %1891 = vmatpush1.msra.mxu1 %v1430_v31 }
 0x51b   : > { %1892 = vmatprep.subr.mxu1 %v1426_v49 }
 0x51c   : > { %v4244_v19 = vpop.f32.mrf.mxu0  ;;  %1893 = vmatpush1.msra.mxu1 %v1424_v48 }
 0x51d   : > { %1894 = vmatprep.subr.mxu1 %v1420_v7 }
 0x51e   : > { %v4248_v29 = vpop.f32.mrf.mxu0  ;;  %1895 = vmatpush1.msra.mxu1 %v1418_v32 }
 0x51f   : > { %1896 = vmatprep.subr.mxu1 %v1414_v0  ;;  %v1216_v0 = vpop.permute.xlu0 %1215 }
 0x520   : > { %v4252_v42 = vpop.f32.mrf.mxu0  ;;  %1897 = vmatpush1.msra.mxu1 %v1412_v54 }
 0x521   : > { %1898 = vmatprep.subr.mxu1 %v1408_v47 }
 0x522   : > { %v4254_v41 = vpop.f32.mrf.mxu0  ;;  %1899 = vmatpush1.msra.mxu1 %v1406_v62 }
 0x524   : > { %v4256_v1 = vpop.f32.mrf.mxu0 }
 0x526   : > { %v4258_v43 = vpop.f32.mrf.mxu0 }
 0x528   : > { %v4260_v57 = vpop.f32.mrf.mxu0 }
 0x52a   : > { %v4262_v22 = vpop.f32.mrf.mxu0 }
 0x52c   : > { %v1563_v26 = vpop.f32.mrf.mxu0 }
 0x52e   : > { %v1567_v2 = vpop.f32.mrf.mxu0 }
 0x530   : > { %v1569_v20 = vpop.f32.mrf.mxu0 }
 0x532   : > { %v1573_v30 = vpop.f32.mrf.mxu0 }
 0x534   : > { %v1575_v59 = vpop.f32.mrf.mxu0 }
 0x535   : > { %v1576_v62 = vadd.f32 %v1575_v59, %v1226_v40 }
 0x536   : > { %v1579_v24 = vpop.f32.mrf.mxu0 }
 0x537   : > { %v1580_v54 = vadd.f32 %v1579_v24, %v1231_v60  ;;  %v1564_v24 = vadd.f32 %v1563_v26, %v1216_v0 }
 0x538   : > { %v1581_v37 = vpop.f32.mrf.mxu0 }
 0x539   : > { %v1582_v32 = vadd.f32 %v1581_v37, %v1231_v60  ;;  %v1211_v37 = vpop.permute.xlu0 %1210  ;;  %v1568_v60 = vadd.f32 %v1567_v2, %v1221_v56 }
 0x53a   : > { %v1585_v23 = vpop.f32.mrf.mxu0  ;;  %v1556_v2 = vadd.f32 %v4258_v43, %v1211_v37 }
 0x53b   : > { %v2914_v27 = vpop.f32.mrf.mxu1  ;;  %v1586_v7 = vadd.f32 %v1585_v23, %v1236_v51 }
 0x53c   : > { %v1587_v21 = vpop.f32.mrf.mxu0  ;;  %v1795_v53 = vadd.f32 %v2914_v27, %v4267_v33  ;;  %v1574_v27 = vadd.f32 %v1573_v30, %v1226_v40  ;;  %v1558_v40 = vadd.f32 %v4260_v57, %v1211_v37 }
 0x53d   : > { %v1789_v17 = vpop.f32.mrf.mxu1  ;;  %v1588_v31 = vadd.f32 %v1587_v21, %v1236_v51  ;;  %v1570_v21 = vadd.f32 %v1569_v20, %v1221_v56  ;;  %v1562_v20 = vadd.f32 %v4262_v22, %v1216_v0 }
 0x53e   : > { %v1790_v14 = vadd.f32 %v4267_v33, %v1789_v17  ;;  %v1591_v15 = vpop.f32.mrf.mxu0 }
 0x53f   : > { %v1592_v50 = vadd.f32 %v1591_v15, %v1241_v9 }
 0x540   : > { %v1593_v52 = vpop.f32.mrf.mxu0  ;;  %1933 = vmatmul.mubr.f32.vlgmr.msra.gmra.mxu1 %v1790_v14  ;;  %v1206_v14 = vpop.permute.xlu0 %1205 }
 0x541   : > { %v1594_v55 = vadd.f32 %v1593_v52, %v1241_v9  ;;  %1938 = vmatprep.mubr.f32.mxu1 %v3295_v8  ;;  %v1552_v56 = vadd.f32 %v4256_v1, %v1206_v14  ;;  %v1550_v22 = vadd.f32 %v4254_v41, %v1206_v14 }
 0x543   : > { %v2917_v13 = vpop.f32.mrf.mxu1  ;;  %2173 = vmatprep.subr.mxu1 %v1594_v55 }
 0x544   : > { %1939 = vmatmul.mubr.f32.gmra.mxu1 %v1795_v53  ;;  %v1805_v5 = vadd.f32 %v2917_v13, %v4267_v33  ;;  %v1201_v26 = vpop.permute.xlu0 %1200 }
 0x545   : > { %2174 = vmatpush1.xpose.msra.mxu1 %v1592_v50  ;;  %v1799_v49 = vpop.f32.mrf.mxu1  ;;  %1944 = vmatprep.mubr.f32.mxu1 %v3295_v8  ;;  %v1546_v51 = vadd.f32 %v4252_v42, %v1201_v26  ;;  %v1544_v1 = vadd.f32 %v4248_v29, %v1201_v26 }
 0x546   : > { %v1800_v48 = vadd.f32 %v4267_v33, %v1799_v49  ;;  %2175 = vmatprep.subr.mxu1 %v1588_v31 }
 0x548   : > { %1945 = vmatmul.mubr.f32.gmra.mxu1 %v1800_v48  ;;  %v1196_v13 = vpop.permute.xlu0 %1195 }
 0x549   : > { %2176 = vmatpush1.xpose.msra.mxu1 %v1586_v7  ;;  %1950 = vmatprep.mubr.f32.mxu1 %v3295_v8  ;;  %v1540_v31 = vadd.f32 %v4244_v19, %v1196_v13  ;;  %v1538_v48 = vadd.f32 %v4240_v34, %v1196_v13  ;;  %v1186_v19 = vpop.permute.xlu1 %1185 }
 0x54a   : > { %2177 = vmatprep.subr.mxu1 %v1582_v32 }
 0x54b   : > { %v2920_v47 = vpop.f32.mrf.mxu1 }
 0x54c   : > { %1951 = vmatmul.mubr.f32.gmra.mxu1 %v1805_v5  ;;  %v1815_v17 = vadd.f32 %v2920_v47, %v4267_v33  ;;  %v1191_v41 = vpop.permute.xlu0 %1190  ;;  %v1528_v5 = vadd.f32 %v4228_v12, %v1186_v19  ;;  %v1526_v47 = vadd.f32 %v4224_v10, %v1186_v19 }
 0x54d   : > { %2178 = vmatpush1.xpose.msra.mxu1 %v1580_v54  ;;  %v1809_v9 = vpop.f32.mrf.mxu1  ;;  %1956 = vmatprep.mubr.f32.mxu1 %v3295_v8  ;;  %v1534_v7 = vadd.f32 %v4236_v16, %v1191_v41  ;;  %v1532_v29 = vadd.f32 %v4232_v6, %v1191_v41  ;;  %v1176_v12 = vpop.permute.xlu1 %1175 }
 0x54e   : > { %2179 = vmatprep.subr.mxu1 %v1576_v62  ;;  %v1810_v23 = vadd.f32 %v4267_v33, %v1809_v9  ;;  %v1516_v37 = vadd.f32 %v4216_v58, %v1176_v12  ;;  %v1514_v10 = vadd.f32 %v4214_v35, %v1176_v12 }
 0x550   : > { %1957 = vmatmul.mubr.f32.gmra.mxu1 %v1810_v23  ;;  %v1181_v34 = vpop.permute.xlu0 %1180 }
 0x551   : > { %2180 = vmatpush1.xpose.msra.mxu1 %v1574_v27  ;;  %1962 = vmatprep.mubr.f32.mxu1 %v3295_v8  ;;  %v1522_v62 = vadd.f32 %v4220_v11, %v1181_v34  ;;  %v1520_v6 = vadd.f32 %v4218_v28, %v1181_v34 }
 0x552   : > { %2181 = vmatprep.subr.mxu1 %v1570_v21 }
 0x553   : > { %v2923_v59 = vpop.f32.mrf.mxu1 }
 0x554   : > { %1963 = vmatmul.mubr.f32.gmra.mxu1 %v1815_v17  ;;  %v1825_v52 = vadd.f32 %v2923_v59, %v4267_v33 }
 0x555   : > { %2182 = vmatpush1.xpose.msra.mxu1 %v1568_v60  ;;  %v1819_v15 = vpop.f32.mrf.mxu1  ;;  %1968 = vmatprep.mubr.f32.mxu1 %v3295_v8 }
 0x556   : > { %2183 = vmatprep.subr.mxu1 %v1564_v24  ;;  %v1820_v30 = vadd.f32 %v4267_v33, %v1819_v15 }
 0x558   : > { %1969 = vmatmul.mubr.f32.gmra.mxu1 %v1820_v30 }
 0x559   : > { %2184 = vmatpush1.xpose.msra.mxu1 %v1562_v20  ;;  %1974 = vmatprep.mubr.f32.mxu1 %v3295_v8 }
 0x55a   : > { %2185 = vmatprep.subr.mxu1 %v1558_v40 }
 0x55b   : > { %v2926_v55 = vpop.f32.mrf.mxu1 }
 0x55c   : > { %1975 = vmatmul.mubr.f32.gmra.mxu1 %v1825_v52  ;;  %v1835_v50 = vadd.f32 %v2926_v55, %v4267_v33 }
 0x55d   : > { %2186 = vmatpush1.xpose.msra.mxu1 %v1556_v2  ;;  %v1829_v53 = vpop.f32.mrf.mxu1  ;;  %1980 = vmatprep.mubr.f32.mxu1 %v3295_v8 }
 0x55e   : > { %2187 = vmatprep.subr.mxu1 %v1552_v56  ;;  %v1830_v57 = vadd.f32 %v4267_v33, %v1829_v53 }
 0x560   : > { %1981 = vmatmul.mubr.f32.gmra.mxu1 %v1830_v57  ;;  %v1067_v57 = vld [vmem:[%s4616_s8 + $0x80] sm:$0xff] }
 0x561   : > { %2188 = vmatpush1.xpose.msra.mxu1 %v1550_v22  ;;  %1986 = vmatprep.mubr.f32.mxu1 %v3295_v8  ;;  %v1068_v22 = vld [vmem:[%s4616_s8 + $0x88] sm:$0xff] }
 0x562   : > { %2189 = vmatprep.subr.mxu1 %v1546_v51 }
 0x563   : > { %v2929_v43 = vpop.f32.mrf.mxu1 }
 0x564   : > { %1987 = vmatmul.mubr.f32.gmra.mxu1 %v1835_v50  ;;  %v1845_v32 = vadd.f32 %v2929_v43, %v4267_v33 }
 0x565   : > { %2190 = vmatpush1.xpose.msra.mxu1 %v1544_v1  ;;  %v1839_v49 = vpop.f32.mrf.mxu1  ;;  %1992 = vmatprep.mubr.f32.mxu1 %v3295_v8 }
 0x566   : > { %2191 = vmatprep.subr.mxu1 %v1540_v31  ;;  %v1840_v42 = vadd.f32 %v4267_v33, %v1839_v49 }
 0x568   : > { %1993 = vmatmul.mubr.f32.gmra.mxu1 %v1840_v42 }
 0x569   : > { %2192 = vmatpush1.xpose.msra.mxu1 %v1538_v48  ;;  %1998 = vmatprep.mubr.f32.mxu1 %v3295_v8 }
 0x56a   : > { %2193 = vmatprep.subr.mxu1 %v1534_v7 }
 0x56b   : > { %v2932_v0 = vpop.f32.mrf.mxu1 }
 0x56c   : > { %1999 = vmatmul.mubr.f32.gmra.mxu1 %v1845_v32  ;;  %v1855_v9 = vadd.f32 %v2932_v0, %v4267_v33 }
 0x56d   : > { %2194 = vmatpush1.xpose.msra.mxu1 %v1532_v29  ;;  %v1849_v54 = vpop.f32.mrf.mxu1  ;;  %2004 = vmatprep.mubr.f32.mxu1 %v3295_v8 }
 0x56e   : > { %2195 = vmatprep.subr.mxu1 %v1528_v5  ;;  %v1850_v16 = vadd.f32 %v4267_v33, %v1849_v54 }
 0x570   : > { %2005 = vmatmul.mubr.f32.gmra.mxu1 %v1850_v16 }
 0x571   : > { %2196 = vmatpush1.xpose.msra.mxu1 %v1526_v47  ;;  %2010 = vmatprep.mubr.f32.mxu1 %v3295_v8 }
 0x572   : > { %2197 = vmatprep.subr.mxu1 %v1522_v62 }
 0x573   : > { %v2935_v23 = vpop.f32.mrf.mxu1 }
 0x574   : > { %2011 = vmatmul.mubr.f32.gmra.mxu1 %v1855_v9  ;;  %v1865_v21 = vadd.f32 %v2935_v23, %v4267_v33 }
 0x575   : > { %2198 = vmatpush1.xpose.msra.mxu1 %v1520_v6  ;;  %v1859_v27 = vpop.f32.mrf.mxu1  ;;  %2016 = vmatprep.mubr.f32.mxu1 %v3295_v8 }
 0x576   : > { %2199 = vmatprep.subr.mxu1 %v1516_v37  ;;  %v1860_v11 = vadd.f32 %v4267_v33, %v1859_v27 }
 0x578   : > { %2017 = vmatmul.mubr.f32.gmra.mxu1 %v1860_v11 }
 0x579   : > { %2200 = vmatpush1.xpose.msra.mxu1 %v1514_v10  ;;  %2022 = vmatprep.mubr.f32.mxu1 %v3295_v8 }
 0x57c   : > { %2023 = vmatmul.mubr.f32.gmra.mxu1 %v1865_v21 }
 0x600   : > { %v4317_v28 = vpop.f32.mrf.mxu1 }
 0x602   : > { %v4319_v58 = vpop.f32.mrf.mxu1 }
 0x603   : > { %v2029_v17 = vmax.f32 %v4317_v28, %v4319_v58 }
 0x604   : > { %v4323_v60 = vpop.f32.mrf.mxu1 }
 0x605   : > { %2030 = vmax.xlane.f32.xlu0 %v2029_v17 }
 0x606   : > { %v4325_v59 = vpop.f32.mrf.mxu1 }
 0x607   : > { %v2032_v35 = vmax.f32 %v4323_v60, %v4325_v59 }
 0x608   : > { %v4329_v33 = vpop.f32.mrf.mxu1 }
 0x609   : > { %2033 = vmax.xlane.f32.xlu1 %v2032_v35 }
 0x60a   : > { %v4331_v8 = vpop.f32.mrf.mxu1 }
 0x60b   : > { %v2035_v24 = vmax.f32 %v4329_v33, %v4331_v8 }
 0x60c   : > { %v4335_v14 = vpop.f32.mrf.mxu1 }
 0x60d   : > { %2036 = vmax.xlane.f32.xlu0 %v2035_v24 }
 0x60e   : > { %v4337_v15 = vpop.f32.mrf.mxu1 }
 0x60f   : > { %v2038_v30 = vmax.f32 %v4335_v14, %v4337_v15 }
 0x610   : > { %v4341_v20 = vpop.f32.mrf.mxu1 }
 0x611   : > { %2039 = vmax.xlane.f32.xlu1 %v2038_v30 }
 0x612   : > { %v4343_v40 = vpop.f32.mrf.mxu1 }
 0x613   : > { %v2041_v5 = vmax.f32 %v4341_v20, %v4343_v40 }
 0x614   : > { %v4345_v52 = vpop.f32.mrf.mxu1 }
 0x616   : > { %v4347_v26 = vpop.f32.mrf.mxu1 }
 0x617   : > { %v2044_v34 = vmax.f32 %v4345_v52, %v4347_v26 }
 0x618   : > { %v4349_v2 = vpop.f32.mrf.mxu1 }
 0x61a   : > { %v4351_v55 = vpop.f32.mrf.mxu1 }
 0x61b   : > { %v2047_v54 = vmax.f32 %v4349_v2, %v4351_v55 }
 0x61c   : > { %v4353_v56 = vpop.f32.mrf.mxu1 }
 0x61e   : > { %v4355_v53 = vpop.f32.mrf.mxu1 }
 0x61f   : > { %v2050_v62 = vmax.f32 %v4353_v56, %v4355_v53 }
 0x620   : > { %v4363_v51 = vpop.f32.mrf.mxu1 }
 0x622   : > { %1165 = vperm.xlu1 %3061, %v1067_v57   ;;  %v4365_v50 = vpop.f32.mrf.mxu1 }
 0x623   : > { %1170 = vperm.xlu0 %3062, %v1068_v22   ;;  %v2053_v9 = vmax.f32 %v4363_v51, %v4365_v50 }
 0x624   : > { %v4367_v13 = vpop.f32.mrf.mxu1 }
 0x626   : > { %v4369_v1 = vpop.f32.mrf.mxu1 }
 0x627   : > { %v2056_v12 = vmax.f32 %v4367_v13, %v4369_v1 }
 0x628   : > { %v4371_v43 = vpop.f32.mrf.mxu1 }
 0x62a   : > { %v4373_v31 = vpop.f32.mrf.mxu1 }
 0x62b   : > { %v2059_v6 = vmax.f32 %v4371_v43, %v4373_v31 }
 0x62c   : > { %v4375_v49 = vpop.f32.mrf.mxu1 }
 0x62e   : > { %v4377_v42 = vpop.f32.mrf.mxu1 }
 0x62f   : > { %v2062_v23 = vmax.f32 %v4375_v49, %v4377_v42 }
 0x630   : > { %v4379_v41 = vpop.f32.mrf.mxu1 }
 0x632   : > { %v4381_v48 = vpop.f32.mrf.mxu1 }
 0x633   : > { %v2065_v37 = vmax.f32 %v4379_v41, %v4381_v48 }
 0x634   : > { %v4383_v7 = vpop.f32.mrf.mxu1 }
 0x636   : > { %v4385_v32 = vpop.f32.mrf.mxu1 }
 0x637   : > { %v2068_v27 = vmax.f32 %v4383_v7, %v4385_v32 }
 0x638   : > { %v4387_v19 = vpop.f32.mrf.mxu1 }
 0x63a   : > { %v4389_v29 = vpop.f32.mrf.mxu1 }
 0x63b   : > { %v2071_v11 = vmax.f32 %v4387_v19, %v4389_v29 }
 0x63c   : > { %v4391_v0 = vpop.f32.mrf.mxu1 }
 0x63e   : > { %v4397_v16 = vpop.f32.mrf.mxu1 }
 0x63f   : > { %v2074_v47 = vmax.f32 %v4391_v0, %v4397_v16 }
 0x642   : > { %2042 = vmax.xlane.f32.xlu0 %v2041_v5 }
 0x646   : > { %2045 = vmax.xlane.f32.xlu1 %v2044_v34  ;;  %2048 = vmax.xlane.f32.xlu0 %v2047_v54 }
 0x64a   : > { %2051 = vmax.xlane.f32.xlu0 %v2050_v62  ;;  %2075 = vmax.xlane.f32.xlu1 %v2074_v47 }
 0x64e   : > { %2054 = vmax.xlane.f32.xlu0 %v2053_v9 }
 0x652   : > { %2057 = vmax.xlane.f32.xlu0 %v2056_v12 }
 0x656   : > { %2060 = vmax.xlane.f32.xlu0 %v2059_v6 }
 0x65a   : > { %2063 = vmax.xlane.f32.xlu0 %v2062_v23 }
 0x65e   : > { %2066 = vmax.xlane.f32.xlu0 %v2065_v37 }
 0x662   : > { %2069 = vmax.xlane.f32.xlu0 %v2068_v27 }
 0x666   : > { %2072 = vmax.xlane.f32.xlu0 %v2071_v11 }
 0x68e   : > { %v2031_v10 = vpop.xlane.xlu0 %2030 }
 0x68f   : > { %v2077_v21 = vsub.f32 %v4317_v28, %v2031_v10  ;;  %v2078_v17 = vsub.f32 %v4319_v58, %v2031_v10 }
 0x691   : > { %v2109_v35 = vmul.f32 1.442695, %v2077_v21  ;;  %v2111_v24 = vmul.f32 1.442695, %v2078_v17 }
 0x692   : > { %v2034_v30 = vpop.xlane.xlu1 %2033 }
 0x693   : > { %3079 = vpow2.f32 %v2109_v35  ;;  %v2079_v57 = vsub.f32 %v4323_v60, %v2034_v30  ;;  %v2080_v22 = vsub.f32 %v4325_v59, %v2034_v30 }
 0x694   : > { %3081 = vpow2.f32 %v2111_v24 }
 0x695   : > { %v2113_v5 = vmul.f32 1.442695, %v2079_v57  ;;  %v2115_v54 = vmul.f32 1.442695, %v2080_v22 }
 0x696   : > { %v2037_v34 = vpop.xlane.xlu0 %2036 }
 0x697   : > { %3083 = vpow2.f32 %v2113_v5  ;;  %v2081_v47 = vsub.f32 %v4329_v33, %v2037_v34  ;;  %v2082_v62 = vsub.f32 %v4331_v8, %v2037_v34 }
 0x698   : > { %3085 = vpow2.f32 %v2115_v54 }
 0x699   : > { %v2117_v28 = vmul.f32 1.442695, %v2081_v47  ;;  %v2119_v58 = vmul.f32 1.442695, %v2082_v62 }
 0x69a   : > { %v2040_v9 = vpop.xlane.xlu1 %2039 }
 0x69b   : > { %3087 = vpow2.f32 %v2117_v28  ;;  %v2083_v12 = vsub.f32 %v4335_v14, %v2040_v9  ;;  %v2084_v60 = vsub.f32 %v4337_v15, %v2040_v9 }
 0x69c   : > { %3089 = vpow2.f32 %v2119_v58 }
 0x69d   : > { %v2121_v59 = vmul.f32 1.442695, %v2083_v12  ;;  %v2123_v6 = vmul.f32 1.442695, %v2084_v60 }
 0x69e   : > { %v1171_v23 = vpop.permute.xlu0 %1170  ;;  %v1166_v37 = vpop.permute.xlu1 %1165 }
 0x69f   : > { %3091 = vpow2.f32 %v2121_v59  ;;  %v1508_v27 = vadd.f32 %v4210_v44, %v1171_v23  ;;  %v1510_v8 = vadd.f32 %v4212_v61, %v1171_v23  ;;  %v1504_v10 = vadd.f32 %v4208_v36, %v1166_v37 }
 0x6a0   : > { %v3080_v33 = vpop.eup %3079  ;;  %3093 = vpow2.f32 %v2123_v6  ;;  %v1502_v17 = vadd.f32 %v4206_v38, %v1166_v37 }
 0x6a1   : > { %v3082_v11 = vpop.eup %3081  ;;  %2201 = vmatprep.subr.mxu1 %v1510_v8 }
 0x6a2   : > { %2237 = vmatprep.mubr.f32.mxu1 %v3082_v11  ;;  %v4430_v14 = vadd.f32 %v3082_v11, %v3080_v33  ;;  %2202 = vmatpush1.xpose.msra.mxu1 %v1508_v27 }
 0x6a3   : > { %2203 = vmatprep.subr.mxu1 %v1504_v10 }
 0x6a4   : > { %v3084_v15 = vpop.eup %3083 }
 0x6a5   : > { %v3086_v21 = vpop.eup %3085 }
 0x6a6   : > { %v4433_v35 = vadd.f32 %v3086_v21, %v3084_v15  ;;  %2204 = vmatpush1.xpose.msra.mxu1 %v1502_v17 }
 0x6a8   : > { %v3088_v44 = vpop.eup %3087 }
 0x6a9   : > { %v3090_v24 = vpop.eup %3089  ;;  %2238 = vmatmul.mubr.f32.vlgmr.msra.gmra.mxu1 %v3080_v33 }
 0x6aa   : > { %v4435_v61 = vadd.f32 %v3090_v24, %v3088_v44  ;;  %2242 = vmatprep.mubr.f32.mxu1 %v3086_v21 }
 0x6ac   : > { %v3092_v36 = vpop.eup %3091 }
 0x6ad   : > { %v3094_v30 = vpop.eup %3093  ;;  %2243 = vmatmul.mubr.f32.gmra.mxu1 %v3084_v15 }
 0x6ae   : > { %v4437_v57 = vadd.f32 %v3094_v30, %v3092_v36  ;;  %2247 = vmatprep.mubr.f32.mxu1 %v3090_v24 }
 0x6b1   : > { %2248 = vmatmul.mubr.f32.gmra.mxu1 %v3088_v44 }
 0x6b2   : > { %2252 = vmatprep.mubr.f32.mxu1 %v3094_v30 }
 0x6b5   : > { %2253 = vmatmul.mubr.f32.gmra.mxu1 %v3092_v36 }
 0x6cb   : > { %v2043_v22 = vpop.xlane.xlu0 %2042 }
 0x6cc   : > { %v2085_v38 = vsub.f32 %v4341_v20, %v2043_v22  ;;  %v2086_v5 = vsub.f32 %v4343_v40, %v2043_v22 }
 0x6ce   : > { %v2125_v54 = vmul.f32 1.442695, %v2085_v38  ;;  %v2127_v34 = vmul.f32 1.442695, %v2086_v5 }
 0x6cf   : > { %v2046_v47 = vpop.xlane.xlu1 %2045  ;;  %v2049_v62 = vpop.xlane.xlu0 %2048 }
 0x6d0   : > { %3095 = vpow2.f32 %v2125_v54  ;;  %v2087_v28 = vsub.f32 %v4345_v52, %v2046_v47  ;;  %v2088_v58 = vsub.f32 %v4347_v26, %v2046_v47  ;;  %v2090_v9 = vsub.f32 %v4351_v55, %v2049_v62 }
 0x6d1   : > { %3097 = vpow2.f32 %v2127_v34  ;;  %v2089_v59 = vsub.f32 %v4349_v2, %v2049_v62 }
 0x6d2   : > { %v2129_v12 = vmul.f32 1.442695, %v2087_v28  ;;  %v2131_v60 = vmul.f32 1.442695, %v2088_v58  ;;  %v2135_v6 = vmul.f32 1.442695, %v2090_v9 }
 0x6d3   : > { %v2076_v20 = vpop.xlane.xlu1 %2075  ;;  %v2052_v23 = vpop.xlane.xlu0 %2051  ;;  %v2133_v27 = vmul.f32 1.442695, %v2089_v59 }
 0x6d4   : > { %3099 = vpow2.f32 %v2129_v12  ;;  %v2107_v40 = vsub.f32 %v4391_v0, %v2076_v20  ;;  %v2108_v37 = vsub.f32 %v4397_v16, %v2076_v20  ;;  %v2092_v52 = vsub.f32 %v4355_v53, %v2052_v23 }
 0x6d5   : > { %3101 = vpow2.f32 %v2131_v60  ;;  %v2091_v55 = vsub.f32 %v4353_v56, %v2052_v23 }
 0x6d6   : > { %v2169_v26 = vmul.f32 1.442695, %v2107_v40  ;;  %v2171_v33 = vmul.f32 1.442695, %v2108_v37  ;;  %3103 = vpow2.f32 %v2135_v6  ;;  %v2139_v8 = vmul.f32 1.442695, %v2092_v52 }
 0x6d7   : > { %v2055_v11 = vpop.xlane.xlu0 %2054  ;;  %v2137_v10 = vmul.f32 1.442695, %v2091_v55 }
 0x6d8   : > { %3105 = vpow2.f32 %v2169_v26  ;;  %v2094_v2 = vsub.f32 %v4365_v50, %v2055_v11  ;;  %v2093_v0 = vsub.f32 %v4363_v51, %v2055_v11 }
 0x6d9   : > { %3107 = vpow2.f32 %v2171_v33 }
 0x6da   : > { %3109 = vpow2.f32 %v2133_v27  ;;  %v2143_v16 = vmul.f32 1.442695, %v2094_v2  ;;  %v2141_v56 = vmul.f32 1.442695, %v2093_v0 }
 0x6db   : > { %3111 = vpow2.f32 %v2139_v8  ;;  %v2058_v15 = vpop.xlane.xlu0 %2057 }
 0x6dc   : > { %v2096_v53 = vsub.f32 %v4369_v1, %v2058_v15  ;;  %3113 = vpow2.f32 %v2137_v10  ;;  %v2095_v44 = vsub.f32 %v4367_v13, %v2058_v15 }
 0x6dd   : > { %v3096_v21 = vpop.eup %3095  ;;  %3115 = vpow2.f32 %v2143_v16 }
 0x6de   : > { %v3098_v17 = vpop.eup %3097  ;;  %v2147_v24 = vmul.f32 1.442695, %v2096_v53  ;;  %3117 = vpow2.f32 %v2141_v56  ;;  %v2145_v1 = vmul.f32 1.442695, %v2095_v44 }
 0x6df   : > { %2257 = vmatprep.mubr.f32.mxu1 %v3098_v17  ;;  %v2061_v50 = vpop.xlane.xlu0 %2060  ;;  %v4453_v36 = vadd.f32 %v3098_v17, %v3096_v21 }
 0x6e0   : > { %2258 = vmatmul.mubr.f32.gmra.mxu1 %v3096_v21  ;;  %v2098_v51 = vsub.f32 %v4373_v31, %v2061_v50  ;;  %v2097_v38 = vsub.f32 %v4371_v43, %v2061_v50  ;;  %3119 = vpow2.f32 %v2147_v24 }
 0x6e1   : > { %v4456_v30 = vpop.eup %3099  ;;  %3121 = vpow2.f32 %v2145_v1 }
 0x6e2   : > { %v4458_v22 = vpop.eup %3101  ;;  %v2151_v5 = vmul.f32 1.442695, %v2098_v51  ;;  %v2149_v62 = vmul.f32 1.442695, %v2097_v38 }
 0x6e3   : > { %2262 = vmatprep.mubr.f32.mxu1 %v4458_v22  ;;  %v2064_v13 = vpop.xlane.xlu0 %2063  ;;  %v4462_v54 = vpop.eup %3103 }
 0x6e4   : > { %2263 = vmatmul.mubr.f32.gmra.mxu1 %v4456_v30  ;;  %v2100_v34 = vsub.f32 %v4377_v42, %v2064_v13  ;;  %v2099_v43 = vsub.f32 %v4375_v49, %v2064_v13  ;;  %3123 = vpow2.f32 %v2151_v5  ;;  %v2333_v13 = vadd.f32 %v4458_v22, %v4456_v30  ;;  %v2520_v30 = vld [vmem:[#allocation5 + $0x8] sm:$0xff]  ;;  %v2522_v22 = vld [vmem:[#allocation5 + $0x18] sm:$0xff] }
 0x6e5   : > { %v4466_v31 = vpop.eup %3105  ;;  %2267 = vmatprep.mubr.f32.mxu1 %v4462_v54  ;;  %3125 = vpow2.f32 %v2149_v62 }
 0x6e6   : > { %v4469_v47 = vpop.eup %3107  ;;  %v2155_v58 = vmul.f32 1.442695, %v2100_v34  ;;  %v2153_v59 = vmul.f32 1.442695, %v2099_v43  ;;  %v2524_v43 = vld [vmem:[#allocation5 + $0x28] sm:$0xff] }
 0x6e7   : > { %v4472_v28 = vpop.eup %3109  ;;  %v2067_v9 = vpop.xlane.xlu0 %2066  ;;  %v2363_v12 = vadd.f32 %v4469_v47, %v4466_v31 }
 0x6e8   : > { %v4476_v60 = vpop.eup %3111  ;;  %2268 = vmatmul.mubr.f32.gmra.mxu1 %v4472_v28  ;;  %v2102_v42 = vsub.f32 %v4381_v48, %v2067_v9  ;;  %v2101_v49 = vsub.f32 %v4379_v41, %v2067_v9  ;;  %3127 = vpow2.f32 %v2155_v58  ;;  %v2336_v62 = vadd.f32 %v4472_v28, %v4462_v54  ;;  %v2526_v54 = vld [vmem:[#allocation5 + $0x38] sm:$0xff] }
 0x6e9   : > { %2364 = vadd.xlane.f32.xlu0 %v2363_v12  ;;  %2272 = vmatprep.mubr.f32.mxu1 %v4476_v60  ;;  %v3114_v6 = vpop.eup %3113  ;;  %3129 = vpow2.f32 %v2153_v59 }
 0x6ea   : > { %v2159_v20 = vmul.f32 1.442695, %v2102_v42  ;;  %v4482_v40 = vpop.eup %3115  ;;  %v2157_v48 = vmul.f32 1.442695, %v2101_v49  ;;  %v2339_v38 = vadd.f32 %v3114_v6, %v4476_v60  ;;  %v2398_v42 = vld [vmem:[%s4638_s9] sm:$0xff] }
 0x6eb   : > { %v2070_v23 = vpop.xlane.xlu0 %2069  ;;  %v3118_v33 = vpop.eup %3117  ;;  %2968 = vmatprep.mubr.f32.mxu0 %v2398_v42 }
 0x6ec   : > { %2273 = vmatmul.mubr.f32.gmra.mxu1 %v3114_v6  ;;  %v2103_v37 = vsub.f32 %v4383_v7, %v2070_v23  ;;  %v2104_v52 = vsub.f32 %v4385_v32, %v2070_v23  ;;  %3131 = vpow2.f32 %v2159_v20  ;;  %v2342_v34 = vadd.f32 %v3118_v33, %v4482_v40 }
 0x6ed   : > { %2277 = vmatprep.mubr.f32.mxu1 %v4482_v40  ;;  %v3120_v55 = vpop.eup %3119 }
 0x6ee   : > { %v2161_v27 = vmul.f32 1.442695, %v2103_v37  ;;  %v2163_v26 = vmul.f32 1.442695, %v2104_v52  ;;  %v3122_v2 = vpop.eup %3121 }
 0x6ef   : > { %v2073_v41 = vpop.xlane.xlu0 %2072  ;;  %v2345_v51 = vadd.f32 %v3122_v2, %v3120_v55 }
 0x6f0   : > { %3133 = vpow2.f32 %v2161_v27  ;;  %2278 = vmatmul.mubr.f32.gmra.mxu1 %v3118_v33  ;;  %v2105_v8 = vsub.f32 %v4387_v19, %v2073_v41  ;;  %v2106_v11 = vsub.f32 %v4389_v29, %v2073_v41 }
 0x6f1   : > { %3135 = vpow2.f32 %v2163_v26  ;;  %2282 = vmatprep.mubr.f32.mxu1 %v3120_v55  ;;  %v3124_v10 = vpop.eup %3123 }
 0x6f2   : > { %3137 = vpow2.f32 %v2157_v48  ;;  %v2165_v7 = vmul.f32 1.442695, %v2105_v8  ;;  %v2167_v32 = vmul.f32 1.442695, %v2106_v11  ;;  %v3126_v0 = vpop.eup %3125 }
 0x6f3   : > { %v2348_v5 = vadd.f32 %v3126_v0, %v3124_v10 }
 0x6f4   : > { %3139 = vpow2.f32 %v2165_v7  ;;  %2283 = vmatmul.mubr.f32.gmra.mxu1 %v3122_v2 }
 0x6f5   : > { %3141 = vpow2.f32 %v2167_v32  ;;  %2287 = vmatprep.mubr.f32.mxu1 %v3124_v10  ;;  %v3128_v16 = vpop.eup %3127 }
 0x6f6   : > { %v3130_v15 = vpop.eup %3129 }
 0x6f7   : > { %v2351_v24 = vadd.f32 %v3130_v15, %v3128_v16 }
 0x6f8   : > { %2288 = vmatmul.mubr.f32.gmra.mxu1 %v3126_v0 }
 0x6f9   : > { %2292 = vmatprep.mubr.f32.mxu1 %v3128_v16  ;;  %v3132_v53 = vpop.eup %3131 }
 0x6fc   : > { %2293 = vmatmul.mubr.f32.gmra.mxu1 %v3130_v15 }
 0x6fd   : > { %v3134_v19 = vpop.eup %3133  ;;  %2297 = vmatprep.mubr.f32.mxu1 %v3132_v53 }
 0x6fe   : > { %v3136_v29 = vpop.eup %3135 }
 0x6ff   : > { %v3138_v21 = vpop.eup %3137  ;;  %v2357_v17 = vadd.f32 %v3136_v29, %v3134_v19 }
 0x700   : > { %2298 = vmatmul.mubr.f32.gmra.mxu1 %v3138_v21  ;;  %v2354_v1 = vadd.f32 %v3138_v21, %v3132_v53 }
 0x701   : > { %v3140_v56 = vpop.eup %3139  ;;  %2302 = vmatprep.mubr.f32.mxu1 %v3136_v29  ;;  %2358 = vadd.xlane.f32.xlu0 %v2357_v17 }
 0x702   : > { %v3142_v44 = vpop.eup %3141 }
 0x703   : > { %v2360_v50 = vadd.f32 %v3142_v44, %v3140_v56 }
 0x704   : > { %2303 = vmatmul.mubr.f32.gmra.mxu1 %v3134_v19 }
 0x705   : > { %2352 = vadd.xlane.f32.xlu0 %v2351_v24  ;;  %2307 = vmatprep.mubr.f32.mxu1 %v3142_v44 }
 0x706   : > { %2361 = vadd.xlane.f32.xlu1 %v2360_v50 }
 0x708   : > { %2308 = vmatmul.mubr.f32.gmra.mxu1 %v3140_v56 }
 0x709   : > { %2346 = vadd.xlane.f32.xlu0 %v2345_v51  ;;  %2312 = vmatprep.mubr.f32.mxu1 %v4469_v47  ;;  %v2521_v47 = vld [vmem:[#allocation5 + $0x10] sm:$0xff] }
 0x70a   : > { %2355 = vadd.xlane.f32.xlu1 %v2354_v1 }
 0x70c   : > { %2313 = vmatmul.mubr.f32.gmra.mxu1 %v4466_v31  ;;  %v2519_v31 = vld [vmem:[#allocation5] sm:$0xff] }
 0x70d   : > { %2340 = vadd.xlane.f32.xlu0 %v2339_v38 }
 0x70e   : > { %2349 = vadd.xlane.f32.xlu1 %v2348_v5 }
 0x711   : > { %2334 = vadd.xlane.f32.xlu0 %v2333_v13 }
 0x712   : > { %2343 = vadd.xlane.f32.xlu1 %v2342_v34 }
 0x715   : > { %2328 = vadd.xlane.f32.xlu0 %v4437_v57  ;;  %v2523_v57 = vld [vmem:[#allocation5 + $0x20] sm:$0xff] }
 0x716   : > { %2337 = vadd.xlane.f32.xlu1 %v2336_v62 }
 0x719   : > { %2322 = vadd.xlane.f32.xlu0 %v4433_v35  ;;  %v2525_v35 = vld [vmem:[#allocation5 + $0x30] sm:$0xff] }
 0x71a   : > { %2331 = vadd.xlane.f32.xlu1 %v4453_v36 }
 0x71e   : > { %2325 = vadd.xlane.f32.xlu1 %v4435_v61 }
 0x722   : > { %2319 = vadd.xlane.f32.xlu1 %v4430_v14 }
 0x72f   : > { %2529 = vperm.xlu0 %3062, %v2519_v31  }
 0x733   : > { %2534 = vperm.xlu1 %3061, %v2520_v30   ;;  %2544 = vperm.xlu0 %3062, %v2522_v22  }
 0x737   : > { %2539 = vperm.xlu1 %3061, %v2521_v47   ;;  %2554 = vperm.xlu0 %3062, %v2524_v43  }
 0x73b   : > { %2549 = vperm.xlu1 %3061, %v2523_v57   ;;  %2564 = vperm.xlu0 %3062, %v2526_v54  }
 0x73f   : > { %2559 = vperm.xlu1 %3061, %v2525_v35  }
 0x769   : > { %v4502_v36 = vpop.f32.mrf.mxu1 }
 0x76b   : > { %v2241_v61 = vpop.f32.mrf.mxu1 }
 0x76d   : > { %v4504_v14 = vpop.f32.mrf.mxu1 }
 0x76f   : > { %v2246_v28 = vpop.f32.mrf.mxu1 }
 0x771   : > { %v4506_v58 = vpop.f32.mrf.mxu1 }
 0x772   : > { %v2365_v8 = vpop.xlane.xlu0 %2364 }
 0x773   : > { %v2251_v9 = vpop.f32.mrf.mxu1  ;;  %3143 = vrcp.f32 %v2365_v8 }
 0x775   : > { %v4508_v12 = vpop.f32.mrf.mxu1 }
 0x777   : > { %v2256_v60 = vpop.f32.mrf.mxu1 }
 0x780   : > { %v3144_v17 = vpop.eup %3143 }
 0x78a   : > { %v2359_v10 = vpop.xlane.xlu0 %2358 }
 0x78e   : > { %v2353_v29 = vpop.xlane.xlu0 %2352 }
 0x78f   : > { %v2362_v7 = vpop.xlane.xlu1 %2361 }
 0x790   : > { %3145 = vrcp.f32 %v2362_v7 }
 0x791   : > { %3147 = vrcp.f32 %v2359_v10 }
 0x792   : > { %v2347_v5 = vpop.xlane.xlu0 %2346 }
 0x793   : > { %v2356_v15 = vpop.xlane.xlu1 %2355 }
 0x794   : > { %3149 = vrcp.f32 %v2356_v15  ;;  %v2405_v15 = vld [vmem:[%s4638_s9 + $0x38] sm:$0xff] }
 0x795   : > { %3151 = vrcp.f32 %v2353_v29 }
 0x796   : > { %v2341_v22 = vpop.xlane.xlu0 %2340 }
 0x797   : > { %v2350_v50 = vpop.xlane.xlu1 %2349 }
 0x798   : > { %3153 = vrcp.f32 %v2350_v50 }
 0x799   : > { %3155 = vrcp.f32 %v2347_v5 }
 0x79a   : > { %v2335_v35 = vpop.xlane.xlu0 %2334 }
 0x79b   : > { %v2344_v62 = vpop.xlane.xlu1 %2343 }
 0x79c   : > { %3157 = vrcp.f32 %v2344_v62 }
 0x79d   : > { %v3146_v24 = vpop.eup %3145  ;;  %3159 = vrcp.f32 %v2341_v22 }
 0x79e   : > { %v3148_v38 = vpop.eup %3147 }
 0x79f   : > { %v2338_v43 = vpop.xlane.xlu1 %2337 }
 0x7a0   : > { %v4513_v59 = vpop.f32.mrf.mxu1  ;;  %3161 = vrcp.f32 %v2338_v43 }
 0x7a1   : > { %v3150_v34 = vpop.eup %3149  ;;  %3163 = vrcp.f32 %v2335_v35 }
 0x7a2   : > { %v2261_v49 = vpop.f32.mrf.mxu1  ;;  %v3152_v30 = vpop.eup %3151 }
 0x7a3   : > { %v2332_v9 = vpop.xlane.xlu1 %2331  ;;  %v2329_v49 = vpop.xlane.xlu0 %2328 }
 0x7a4   : > { %v4515_v6 = vpop.f32.mrf.mxu1  ;;  %3165 = vrcp.f32 %v2332_v9 }
 0x7a5   : > { %v3154_v57 = vpop.eup %3153  ;;  %3167 = vrcp.f32 %v2329_v49 }
 0x7a6   : > { %v2266_v20 = vpop.f32.mrf.mxu1  ;;  %v3156_v61 = vpop.eup %3155 }
 0x7a8   : > { %v4517_v23 = vpop.f32.mrf.mxu1 }
 0x7a9   : > { %v3158_v60 = vpop.eup %3157 }
 0x7aa   : > { %v2271_v40 = vpop.f32.mrf.mxu1  ;;  %v3160_v20 = vpop.eup %3159 }
 0x7ac   : > { %v4519_v37 = vpop.f32.mrf.mxu1 }
 0x7ad   : > { %v2389_v40 = vmul.f32 %v3160_v20, %v4519_v37 }
 0x7ae   : > { %v2276_v52 = vpop.f32.mrf.mxu1 }
 0x7af   : > { %v3162_v52 = vpop.eup %3161 }
 0x7b0   : > { %v4521_v48 = vpop.f32.mrf.mxu1 }
 0x7b1   : > { %v2390_v42 = vmul.f32 %v3158_v60, %v4521_v48 }
 0x7b2   : > { %v2281_v27 = vpop.f32.mrf.mxu1 }
 0x7b3   : > { %v2326_v27 = vpop.xlane.xlu1 %2325 }
 0x7b4   : > { %v2284_v26 = vpop.f32.mrf.mxu1  ;;  %3169 = vrcp.f32 %v2326_v27 }
 0x7b5   : > { %v2391_v28 = vmul.f32 %v3156_v61, %v2284_v26  ;;  %v2388_v26 = vmul.f32 %v3162_v52, %v4517_v23 }
 0x7b6   : > { %v2286_v33 = vpop.f32.mrf.mxu1 }
 0x7b7   : > { %v3164_v33 = vpop.eup %3163  ;;  %v2320_v8 = vpop.xlane.xlu1 %2319 }
 0x7b8   : > { %v2289_v41 = vpop.f32.mrf.mxu1  ;;  %v2387_v48 = vmul.f32 %v3164_v33, %v4515_v6 }
 0x7b9   : > { %v2392_v54 = vmul.f32 %v3154_v57, %v2289_v41  ;;  %v2323_v41 = vpop.xlane.xlu0 %2322 }
 0x7ba   : > { %v2291_v55 = vpop.f32.mrf.mxu1  ;;  %3171 = vrcp.f32 %v2323_v41 }
 0x7bb   : > { %v3166_v55 = vpop.eup %3165  ;;  %3173 = vrcp.f32 %v2320_v8 }
 0x7bc   : > { %v2294_v11 = vpop.f32.mrf.mxu1  ;;  %v2386_v37 = vmul.f32 %v3166_v55, %v4513_v59 }
 0x7bd   : > { %v2393_v47 = vmul.f32 %v3152_v30, %v2294_v11  ;;  %v3168_v11 = vpop.eup %3167 }
 0x7be   : > { %v2296_v32 = vpop.f32.mrf.mxu1  ;;  %v2385_v7 = vmul.f32 %v3168_v11, %v4508_v12  ;;  %v2399_v12 = vld [vmem:[%s4638_s9 + $0x8] sm:$0xff] }
 0x7c0   : > { %v2299_v2 = vpop.f32.mrf.mxu1 }
 0x7c1   : > { %v2394_v31 = vmul.f32 %v3150_v34, %v2299_v2  ;;  %v3170_v23 = vpop.eup %3169 }
 0x7c2   : > { %v2301_v0 = vpop.f32.mrf.mxu1  ;;  %v2384_v32 = vmul.f32 %v3170_v23, %v4506_v58  ;;  %v2400_v58 = vld [vmem:[%s4638_s9 + $0x10] sm:$0xff] }
 0x7c3   : > { %v2403_v0 = vld [vmem:[%s4638_s9 + $0x28] sm:$0xff] }
 0x7c4   : > { %v2304_v16 = vpop.f32.mrf.mxu1 }
 0x7c5   : > { %v2395_v13 = vmul.f32 %v3148_v38, %v2304_v16  ;;  %v2404_v16 = vld [vmem:[%s4638_s9 + $0x30] sm:$0xff] }
 0x7c6   : > { %v2306_v53 = vpop.f32.mrf.mxu1 }
 0x7c7   : > { %v3172_v2 = vpop.eup %3171  ;;  %v2530_v53 = vpop.permute.xlu0 %2529 }
 0x7c8   : > { %v2309_v19 = vpop.f32.mrf.mxu1  ;;  %v2383_v6 = vmul.f32 %v3172_v2, %v4504_v14  ;;  %v3174_v10 = vpop.eup %3173  ;;  %v2401_v14 = vld [vmem:[%s4638_s9 + $0x18] sm:$0xff] }
 0x7c9   : > { %v2396_v1 = vmul.f32 %v3146_v24, %v2309_v19  ;;  %v2382_v59 = vmul.f32 %v3174_v10, %v4502_v36  ;;  %v2402_v36 = vld [vmem:[%s4638_s9 + $0x20] sm:$0xff]  ;;  %v2535_v19 = vpop.permute.xlu1 %2534 }
 0x7ca   : > { %v2311_v21 = vpop.f32.mrf.mxu1 }
 0x7cc   : > { %v2314_v56 = vpop.f32.mrf.mxu1 }
 0x7cd   : > { %v2397_v44 = vmul.f32 %v3144_v17, %v2314_v56  ;;  %v2545_v17 = vpop.permute.xlu0 %2544  ;;  %v2540_v50 = vpop.permute.xlu1 %2539 }
 0x7ce   : > { %v2316_v51 = vpop.f32.mrf.mxu1 }
 0x7cf   : > { %2936 = vmatprep.subr.mxu0 %v2397_v44 }
 0x7d0   : > { %2937 = vmatpush3.xpose.msra.mxu0 %v2397_v44 }
 0x7d1   : > { %2938 = vmatprep.subr.mxu0 %v2396_v1  ;;  %v2555_v34 = vpop.permute.xlu0 %2554  ;;  %v2550_v30 = vpop.permute.xlu1 %2549 }
 0x7d4   : > { %2939 = vmatpush3.xpose.msra.mxu0 %v2396_v1 }
 0x7d5   : > { %2940 = vmatprep.subr.mxu0 %v2395_v13 }
 0x7d8   : > { %2941 = vmatpush3.xpose.msra.mxu0 %v2395_v13 }
 0x7d9   : > { %2942 = vmatprep.subr.mxu0 %v2394_v31 }
 0x7dc   : > { %2943 = vmatpush3.xpose.msra.mxu0 %v2394_v31 }
 0x7dd   : > { %2944 = vmatprep.subr.mxu0 %v2393_v47 }
 0x7e0   : > { %2945 = vmatpush3.xpose.msra.mxu0 %v2393_v47 }
 0x7e1   : > { %2946 = vmatprep.subr.mxu0 %v2392_v54 }
 0x7e4   : > { %2947 = vmatpush3.xpose.msra.mxu0 %v2392_v54  ;;  %v2565_v54 = vpop.permute.xlu0 %2564 }
 0x7e5   : > { %2948 = vmatprep.subr.mxu0 %v2391_v28 }
 0x7e8   : > { %2949 = vmatpush3.xpose.msra.mxu0 %v2391_v28 }
 0x7e9   : > { %2950 = vmatprep.subr.mxu0 %v2390_v42 }
 0x7ec   : > { %2951 = vmatpush3.xpose.msra.mxu0 %v2390_v42 }
 0x7ed   : > { %2952 = vmatprep.subr.mxu0 %v2389_v40 }
 0x7f0   : > { %2953 = vmatpush3.xpose.msra.mxu0 %v2389_v40 }
 0x7f1   : > { %2954 = vmatprep.subr.mxu0 %v2388_v26 }
 0x7f4   : > { %2955 = vmatpush3.xpose.msra.mxu0 %v2388_v26 }
 0x7f5   : > { %2956 = vmatprep.subr.mxu0 %v2387_v48 }
 0x7f8   : > { %2957 = vmatpush3.xpose.msra.mxu0 %v2387_v48 }
 0x7f9   : > { %2958 = vmatprep.subr.mxu0 %v2386_v37 }
 0x7fc   : > { %2959 = vmatpush3.xpose.msra.mxu0 %v2386_v37 }
 0x7fd   : > { %2960 = vmatprep.subr.mxu0 %v2385_v7 }
 0x800   : > { %2961 = vmatpush3.xpose.msra.mxu0 %v2385_v7 }
 0x801   : > { %2962 = vmatprep.subr.mxu0 %v2384_v32 }
 0x804   : > { %2963 = vmatpush3.xpose.msra.mxu0 %v2384_v32 }
 0x805   : > { %2964 = vmatprep.subr.mxu0 %v2383_v6 }
 0x808   : > { %2965 = vmatpush3.xpose.msra.mxu0 %v2383_v6 }
 0x809   : > { %2966 = vmatprep.subr.mxu0 %v2382_v59 }
 0x80c   : > { %2967 = vmatpush3.xpose.msra.mxu0 %v2382_v59 }
 0x80f   : > { %2969 = vmatmul.mubr.f32.vlgmr.msra.gmra.mxu0 %v2399_v12 }
 0x810   : > { %2971 = vmatprep.mubr.f32.mxu0 %v2400_v58 }
 0x813   : > { %2972 = vmatmul.mubr.f32.gmra.mxu0 %v2401_v14 }
 0x814   : > { %2974 = vmatprep.mubr.f32.mxu0 %v2402_v36 }
 0x817   : > { %2975 = vmatmul.mubr.f32.gmra.mxu0 %v2403_v0 }
 0x818   : > { %2977 = vmatprep.mubr.f32.mxu0 %v2404_v16 }
 0x81b   : > { %2978 = vmatmul.mubr.f32.gmra.mxu0 %v2405_v15 }
 0x8cf   : > { %v2970_v29 = vpop.f32.mrf.mxu0 }
 0x8d0   : > { %v2512_v21 = vadd.f32 %v2970_v29, %v3943_v25 }
 0x8d1   : > { %v2472_v56 = vpop.f32.mrf.mxu0 }
 0x8d2   : > { %v2568_v44 = vadd.f32 %v2535_v19, %v2512_v21  ;;  %v2511_v24 = vadd.f32 %v2472_v56, %v3884_v18 }
 0x8d3   : > { %v2973_v51 = vpop.f32.mrf.mxu0 }
 0x8d4   : > { %2576 = vst [vmem:[%s4556_s2 + $0x8] sm:$0xff] %v2568_v44  ;;  %v2567_v1 = vadd.f32 %v2530_v53, %v2511_v24  ;;  %v2514_v38 = vadd.f32 %v2973_v51, %v3970_v45 }
 0x8d5   : > { %v2482_v5 = vpop.f32.mrf.mxu0 }
 0x8d6   : > { %2575 = vst [vmem:[%s4556_s2] sm:$0xff] %v2567_v1  ;;  %v2570_v25 = vadd.f32 %v2545_v17, %v2514_v38  ;;  %v2513_v13 = vadd.f32 %v2482_v5, %v3957_v39 }
 0x8d7   : > { %v2976_v18 = vpop.f32.mrf.mxu0 }
 0x8d8   : > { %2578 = vst [vmem:[%s4556_s2 + $0x18] sm:$0xff] %v2570_v25  ;;  %v2569_v62 = vadd.f32 %v2540_v50, %v2513_v13  ;;  %v2516_v31 = vadd.f32 %v2976_v18, %v3993_v3  ;;  %v2560_v3 = vpop.permute.xlu1 %2559 }
 0x8d9   : > { %v2492_v22 = vpop.f32.mrf.mxu0 }
 0x8da   : > { %2577 = vst [vmem:[%s4556_s2 + $0x10] sm:$0xff] %v2569_v62  ;;  %v2572_v47 = vadd.f32 %v2555_v34, %v2516_v31  ;;  %v2515_v45 = vadd.f32 %v2492_v22, %v3981_v46 }
 0x8db   : > { %v2979_v43 = vpop.f32.mrf.mxu0 }
 0x8dc   : > { %2580 = vst [vmem:[%s4556_s2 + $0x28] sm:$0xff] %v2572_v47  ;;  %v2571_v57 = vadd.f32 %v2550_v30, %v2515_v45  ;;  %v2518_v39 = vadd.f32 %v2979_v43, %v4014_v63 }
 0x8dd   : > { %v2502_v35 = vpop.f32.mrf.mxu0  ;;  %v2636_v46 = vld [vmem:[%s4556_s2] sm:$0xff] (%p3411_p7) }
 0x8de   : > { %2579 = vst [vmem:[%s4556_s2 + $0x20] sm:$0xff] %v2571_v57  ;;  %v2574_v61 = vadd.f32 %v2565_v54, %v2518_v39  ;;  %v2517_v28 = vadd.f32 %v2502_v35, %v4005_v4  ;;  %2589 = sbr.rel (!%p3411_p7) target bundleno = 2283 (0x8eb), region = 114  ;;  %v2638_v4 = vld [vmem:[%s4556_s2 + $0x8] sm:$0xff] (%p3411_p7)  ;;  %2637 = vst [vmem:[%s2593_s19] sm:$0xff] (%p3411_p7), %v2636_v46 }
 0x8df   : > { %v2642_v60 = vld [vmem:[%s4556_s2 + $0x18] sm:$0xff] (%p3411_p7)  ;;  %2639 = vst [vmem:[%s2593_s19 + $0x10] sm:$0xff] (%p3411_p7), %v2638_v4 }
 0x8e0   : > { %2582 = vst [vmem:[%s4556_s2 + $0x38] sm:$0xff] %v2574_v61  ;;  %v2573_v9 = vadd.f32 %v2560_v3, %v2517_v28  ;;  %2643 = vst [vmem:[%s2593_s19 + $0x30] sm:$0xff] (%p3411_p7), %v2642_v60 }
 0x8e1   : > { %v2640_v63 = vld [vmem:[%s4556_s2 + $0x10] sm:$0xff] (%p3411_p7) }
 0x8e2   : > { %2581 = vst [vmem:[%s4556_s2 + $0x30] sm:$0xff] %v2573_v9  ;;  %2641 = vst [vmem:[%s2593_s19 + $0x20] sm:$0xff] (%p3411_p7), %v2640_v63 }
 0x8e3   : > { %v2646_v49 = vld [vmem:[%s4556_s2 + $0x28] sm:$0xff] }
 0x8e4   : > { %2647 = vst [vmem:[%s2593_s19 + $0x50] sm:$0xff] %v2646_v49 }
 0x8e5   : > { %v2644_v42 = vld [vmem:[%s4556_s2 + $0x20] sm:$0xff] }
 0x8e6   : > { %2645 = vst [vmem:[%s2593_s19 + $0x40] sm:$0xff] %v2644_v42 }
 0x8e7   : > { %v2650_v40 = vld [vmem:[%s4556_s2 + $0x38] sm:$0xff] }
 0x8e8   : > { %2651 = vst [vmem:[%s2593_s19 + $0x70] sm:$0xff] %v2650_v40 }
 0x8e9   : > { %v2648_v20 = vld [vmem:[%s4556_s2 + $0x30] sm:$0xff] }
 0x8ea   : > { %2649 = vst [vmem:[%s2593_s19 + $0x60] sm:$0xff] %v2648_v20 }
 0x8eb PF: > { %s23_s23 = sadd.s32 1, %s3289_s23   ;;  %s4642_s20 = sld [smem:[#allocation14_spill]] }
 0x8ec   : > { %p20_p7 = scmp.ge.s32.totalorder %s23_s23, 6   ;;  %s4643_s26 = sld [smem:[#allocation11_spill]] }
 0x8ed   : > { %s4644_s16 = sld [smem:[#allocation12_spill]]  ;;  %s4645_s17 = smov %s3269_s18 }
 0x8ee   : > { %s4647_s19 = smov %s3281_s21 }
 0x8ef   :  { %22 = sbr.rel (!%p20_p7) target bundleno = 9 (0x9), region = 187 }
 0x8f1   : > { %s4646_s18 = smov %s4642_s20  ;;  %s4648_s20 = smov %s3285_s22 }
 0x8f2   : > { %s4649_s21 = smov %s4643_s26 }
 0x8f3   : > { %s4650_s22 = smov %s4644_s16 }
 0x8f4   :  { %2667 = vsyncpa [#allocation4], 1 }
 0x8f5   :  { %2669 = vsyncpa [#allocation4 + $0x1], 1 }
 0x8f6   :  { %2670 = vsyncpa [#allocation6], 1 }

</bundles_post_ra>
